<compile_context>
chip_gen: v5e
topology: v5e:2x2
jax: 0.10.0
libtpu: 0.0.40
codegen_flags: <defaults>
</compile_context>

<pallas_src>
import jax
import jax.numpy as jnp
from jax.experimental import pallas as pl
from jax.experimental.pallas import tpu as pltpu


def _make_mriblock_kernel(H, W, HWp, C, nb, compute_dtype):
    """Kernel closure. H, W: true spatial dims; HWp: lane-padded H*W."""

    def kernel(x1_ref, x2_ref, col_ref,
               bn1a_ref, bn1b_ref, bn2_ref, bnra_ref, bnrb_ref,
               bn3a_ref, bn3b_ref, bn4_ref,
               w1a_ref, w1b_ref, b1_ref, w2_ref, b2_ref,
               wra_ref, wrb_ref, br_ref,
               w3a_ref, w3b_ref, b3_ref, w4_ref, b4_ref,
               x3_out, x4_out):
        # ---- hoisted (once per grid step) boundary machinery ------------------
        # Flat lane position; rows are contiguous flat ranges so the row masks
        # are pure range compares (no vector int div/mod).  Columns come from a
        # tiny (1, HWp) map broadcast along sublanes once.
        pos = jax.lax.broadcasted_iota(jnp.int32, (C, HWp), 1)
        col = jnp.broadcast_to(col_ref[...], (C, HWp))

        def edge_masks(d):
            row_m = {-1: pos >= d * W, 1: pos < (H - d) * W}
            col_m = {-1: col >= d, 1: col < W - d}
            return row_m, col_m

        row_m1, col_m1 = edge_masks(1)   # conv2: 3x3, dilation 1, padding 1
        row_m2, col_m2 = edge_masks(2)   # conv4: 3x3, dilation 2, padding 2

        def bn_relu(m, bn_ref):
            # folded inference BatchNorm + ReLU; per-channel (scale, bias) (C, 1)
            return jnp.maximum(m * bn_ref[0] + bn_ref[1], 0.0)

        def bn_relu_c(m, bn_ref):
            return bn_relu(m, bn_ref).astype(compute_dtype)

        def conv1x1_cat(ya, yb, wa_ref, wb_ref, b_ref):
            # conv1x1(cat(a, b)) == Wa @ a + Wb @ b   (no (2C, HW) concat)
            return (jnp.dot(wa_ref[...], ya, preferred_element_type=jnp.float32)
                    + jnp.dot(wb_ref[...], yb, preferred_element_type=jnp.float32)
                    + b_ref[...])

        def conv3x3(m, w_ref, b_ref, dil, row_m, col_m):
            # Shift-style "same" 3x3 conv (padding == dilation): 9 accumulated
            # (Cout,Cin)@(Cin,HW) MXU matmuls into one f32 accumulator.  Boundary
            # masks kill the modulo-HWp wraparound of the flat rolls.
            acc = None
            for kh in range(3):
                dy = (kh - 1) * dil
                for kw in range(3):
                    dx = (kw - 1) * dil
                    delta = dy * W + dx
                    t = m if delta == 0 else pltpu.roll(m, (-delta) % HWp, axis=1)
                    rm = row_m.get(kh - 1)
                    cm = col_m.get(kw - 1)
                    if rm is not None and cm is not None:
                        valid = jnp.logical_and(rm, cm)
                    else:
                        valid = rm if rm is not None else cm
                    if valid is not None:
                        t = jnp.where(valid, t, jnp.zeros_like(t))
                    p = jnp.dot(w_ref[kh * 3 + kw], t,
                                preferred_element_type=jnp.float32)
                    acc = p if acc is None else acc + p
            return acc + b_ref[...]

        def body(b, carry):
            x1 = x1_ref[b]                       # (C, HWp) f32
            x2 = x2_ref[b]
            # x_res = conv_res1(relu(bn_res1(cat(x1, x2))))
            x_res = conv1x1_cat(bn_relu_c(x1, bnra_ref), bn_relu_c(x2, bnrb_ref),
                                wra_ref, wrb_ref, br_ref)
            # x3 = conv2(relu(bn2(conv1(relu(bn1(cat(x1, x2)))))))
            x3_tmp = conv1x1_cat(bn_relu_c(x1, bn1a_ref), bn_relu_c(x2, bn1b_ref),
                                 w1a_ref, w1b_ref, b1_ref)
            x3 = conv3x3(bn_relu_c(x3_tmp, bn2_ref), w2_ref, b2_ref,
                         dil=1, row_m=row_m1, col_m=col_m1)
            # x4 = conv4(relu(bn4(conv3(relu(bn3(cat(x2, x3))))))) + x_res
            x4_tmp = conv1x1_cat(bn_relu_c(x2, bn3a_ref), bn_relu_c(x3, bn3b_ref),
                                 w3a_ref, w3b_ref, b3_ref)
            x4 = conv3x3(bn_relu_c(x4_tmp, bn4_ref), w4_ref, b4_ref,
                         dil=2, row_m=row_m2, col_m=col_m2) + x_res
            x3_out[b] = x3
            x4_out[b] = x4
            return carry

        if nb == 1:
            body(0, 0)
        else:
            jax.lax.fori_loop(0, nb, body, 0)

    return kernel


def mri_block_forward(x1, x2, params, compute_dtype=None, nb=None):
    """x1, x2: (N, C, H, W) float32 (NCHW).  Returns (x3, x4), each NCHW f32."""
    N, C, H, W = x1.shape
    assert x2.shape == (N, C, H, W)

    if compute_dtype is None:
        # Regime-aware default: at small C the MXU is underfilled and the kernel
        # is VPU/store-bound, so f32 operands keep full accuracy for free; at
        # larger C bf16 operands ~double MXU rate and halve activation traffic.
        compute_dtype = jnp.bfloat16 if C >= 32 else jnp.float32
    cd = compute_dtype

    HW = H * W
    HWp = ((HW + 127) // 128) * 128          # lane-dense, unmasked stores/rolls
    x1f = x1.reshape(N, C, HW)               # free reshape — no transpose
    x2f = x2.reshape(N, C, HW)
    if HWp != HW:
        padw = ((0, 0), (0, 0), (0, HWp - HW))
        x1f = jnp.pad(x1f, padw)
        x2f = jnp.pad(x2f, padw)

    if nb is None:
        # Batch items per grid step: amortize the ~0.35us/step overhead for large
        # N while keeping >= 2 grid steps so both v7x TensorCores get work.
        nb = max(1, N // 8)
        while N % nb:
            nb -= 1
    assert N % nb == 0

    # Split the 2C-input 1x1 convs / BNs so the kernel never builds a (2C, HW)
    # concat; pre-cast matmul weights to the compute dtype (halves weight DMA).
    def split_w(w_hwio):                      # (1,1,2C,C) -> two (Cout, Cin)=(C, C)
        w = w_hwio[0, 0].T.astype(cd)         # (C, 2C)
        return w[:, :C], w[:, C:]

    def tapmajor(w_hwio):                     # (3,3,Cin,Cout) -> (9, Cout, Cin)
        return jnp.transpose(w_hwio, (0, 1, 3, 2)).reshape(9, C, C).astype(cd)

    w1a, w1b = split_w(params["w1_hwio"])
    wra, wrb = split_w(params["wr_hwio"])
    w3a, w3b = split_w(params["w3_hwio"])
    w2 = tapmajor(params["w2_hwio"])
    w4 = tapmajor(params["w4_hwio"])

    bn1a, bn1b = params["bn1"][:, :C], params["bn1"][:, C:]
    bnra, bnrb = params["bnr"][:, :C], params["bnr"][:, C:]
    bn3a, bn3b = params["bn3"][:, :C], params["bn3"][:, C:]
    bn2, bn4 = params["bn2"], params["bn4"]
    b1, b2, br = params["b1"], params["b2"], params["br"]
    b3, b4 = params["b3"], params["b4"]

    # Tiny (1, HWp) int32 column map (4 B/pixel) — avoids vector int div/mod in
    # the kernel; row masks need no map at all (flat range compares on an iota).
    col = (jnp.arange(HWp, dtype=jnp.int32) % W)[None, :]

    const_args = (col,
                  bn1a, bn1b, bn2, bnra, bnrb, bn3a, bn3b, bn4,
                  w1a, w1b, b1, w2, b2,
                  wra, wrb, br,
                  w3a, w3b, b3, w4, b4)

    img_spec = pl.BlockSpec((nb, C, HWp), lambda n: (n, 0, 0))

    def _full_spec(a):
        zeros = (0,) * a.ndim
        return pl.BlockSpec(a.shape, lambda n, _z=zeros: _z)

    in_specs = [img_spec, img_spec] + [_full_spec(a) for a in const_args]
    out_specs = [img_spec, img_spec]
    out_shape = [jax.ShapeDtypeStruct((N, C, HWp), jnp.float32)] * 2

    # Generation-aware VMEM budget (v5e/v6e: 128 MiB, v7x: 64 MiB per core).
    try:
        vmem_cap = int(pltpu.get_tpu_info().vmem_capacity_bytes)
    except Exception:
        vmem_cap = 64 * 1024 * 1024
    vmem_limit = max(32 * 1024 * 1024, vmem_cap - 16 * 1024 * 1024)

    x3f, x4f = pl.pallas_call(
        _make_mriblock_kernel(H, W, HWp, C, nb, cd),
        grid_spec=pltpu.PrefetchScalarGridSpec(
            num_scalar_prefetch=0,
            grid=(N // nb,),
            in_specs=in_specs,
            out_specs=out_specs,
        ),
        out_shape=out_shape,
        compiler_params=pltpu.CompilerParams(
            # Batch blocks are independent -> shard across TensorCores on v7x.
            dimension_semantics=("parallel",),
            vmem_limit_bytes=vmem_limit,
        ),
    )(x1f, x2f, *const_args)

    x3 = x3f[:, :, :HW].reshape(N, C, H, W)
    x4 = x4f[:, :, :HW].reshape(N, C, H, W)
    return x3, x4


def init_params(key, C):
    eps = 1e-5
    keys = jax.random.split(key, 15)

    def bn_fold(k, c):
        k1, k2, k3, k4 = jax.random.split(k, 4)
        gamma = 1.0 + 0.1 * jax.random.normal(k1, (c,), jnp.float32)
        beta = 0.1 * jax.random.normal(k2, (c,), jnp.float32)
        running_mean = 0.1 * jax.random.normal(k3, (c,), jnp.float32)
        running_var = 1.0 + 0.1 * jax.random.uniform(k4, (c,), jnp.float32)
        scale = gamma / jnp.sqrt(running_var + eps)
        bias = beta - running_mean * scale
        return jnp.stack([scale, bias], axis=0)[:, :, None]    # (2, c, 1)

    def conv_w(k, kh, kw, cin, cout):
        fan_in = kh * kw * cin
        return jax.random.normal(k, (kh, kw, cin, cout), jnp.float32) / jnp.sqrt(fan_in)

    def conv_b(k, cout):
        return 0.1 * jax.random.normal(k, (cout, 1), jnp.float32)

    p = {}
    p["bn1"] = bn_fold(keys[0], 2 * C)
    p["bn2"] = bn_fold(keys[1], C)
    p["bnr"] = bn_fold(keys[2], 2 * C)
    p["bn3"] = bn_fold(keys[3], 2 * C)
    p["bn4"] = bn_fold(keys[4], C)

    p["w1_hwio"] = conv_w(keys[5], 1, 1, 2 * C, C)
    p["b1"] = conv_b(keys[6], C)
    p["w2_hwio"] = conv_w(keys[7], 3, 3, C, C)
    p["b2"] = conv_b(keys[8], C)
    p["wr_hwio"] = conv_w(keys[9], 1, 1, 2 * C, C)
    p["br"] = conv_b(keys[10], C)
    p["w3_hwio"] = conv_w(keys[11], 1, 1, 2 * C, C)
    p["b3"] = conv_b(keys[12], C)
    p["w4_hwio"] = conv_w(keys[13], 3, 3, C, C)
    p["b4"] = conv_b(keys[14], C)
    return p


def reference_forward(x1, x2, params, compute_dtype=jnp.float32):
    """Plain-JAX reference (NCHW in/out), inference-mode BatchNorm.  With
    compute_dtype=bf16 the conv operands are cast exactly like the kernel's
    bf16 path (f32 accumulation)."""
    to_nhwc = lambda v: jnp.transpose(v, (0, 2, 3, 1))
    to_nchw = lambda v: jnp.transpose(v, (0, 3, 1, 2))

    def bn_relu(v, bn):
        return jnp.maximum(v * bn[0, :, 0] + bn[1, :, 0], 0.0)

    def conv(v, w, b, pad, dil):
        out = jax.lax.conv_general_dilated(
            v.astype(compute_dtype), w.astype(compute_dtype),
            window_strides=(1, 1),
            padding=[(pad, pad), (pad, pad)],
            rhs_dilation=(dil, dil),
            dimension_numbers=("NHWC", "HWIO", "NHWC"),
            precision=jax.lax.Precision.HIGHEST,
            preferred_element_type=jnp.float32)
        return out + b.reshape(1, 1, 1, -1)

    x1n, x2n = to_nhwc(x1), to_nhwc(x2)
    xa = jnp.concatenate([x1n, x2n], axis=-1)
    x_res = conv(bn_relu(xa, params["bnr"]), params["wr_hwio"], params["br"], 0, 1)
    x3t = conv(bn_relu(xa, params["bn1"]), params["w1_hwio"], params["b1"], 0, 1)
    x3 = conv(bn_relu(x3t, params["bn2"]), params["w2_hwio"], params["b2"], 1, 1)
    xt = jnp.concatenate([x2n, x3], axis=-1)
    x4t = conv(bn_relu(xt, params["bn3"]), params["w3_hwio"], params["b3"], 0, 1)
    x4 = conv(bn_relu(x4t, params["bn4"]), params["w4_hwio"], params["b4"], 2, 2) + x_res
    return to_nchw(x3), to_nchw(x4)


if __name__ == "__main__":
    key = jax.random.PRNGKey(0)
    kx, kp, kx2, kp2 = jax.random.split(key, 4)

    # ---- Case 1: N=2, C=4, 16x16 (HW already a multiple of 128) ----
    N, C, H, W = 2, 4, 16, 16
    # Module input: a stack of two NCHW tensors (x[0] = x1, x[1] = x2).
    x = jax.random.normal(kx, (2, N, C, H, W), jnp.float32)
    x1, x2 = x[0], x[1]
    params = init_params(kp, C)

    # f32-operand path (default at this small C) vs f32 reference.
    x3, x4 = mri_block_forward(x1, x2, params, compute_dtype=jnp.float32)
    jax.block_until_ready((x3, x4))
    r3, r4 = reference_forward(x1, x2, params, jnp.float32)
    assert x3.shape == (N, C, H, W) and x4.shape == (N, C, H, W)
    assert jnp.allclose(x3, r3, atol=1e-3, rtol=1e-3)
    assert jnp.allclose(x4, r4, atol=1e-3, rtol=1e-3)

    # bf16-operand MXU path (f32 accumulation) vs bf16-operand reference.
    xb3, xb4 = mri_block_forward(x1, x2, params, compute_dtype=jnp.bfloat16)
    jax.block_until_ready((xb3, xb4))
    rb3, rb4 = reference_forward(x1, x2, params, jnp.bfloat16)
    assert jnp.allclose(xb3, rb3, atol=2e-3, rtol=2e-3)
    assert jnp.allclose(xb4, rb4, atol=2e-3, rtol=2e-3)

    # ---- Case 2: HW not a multiple of 128 exercises the lane-padding path ----
    N2, C2, H2, W2 = 2, 4, 12, 20
    x1b = jax.random.normal(kx2, (N2, C2, H2, W2), jnp.float32)
    x2b = jax.random.normal(jax.random.fold_in(kx2, 1), (N2, C2, H2, W2), jnp.float32)
    params2 = init_params(kp2, C2)
    y3, y4 = mri_block_forward(x1b, x2b, params2, compute_dtype=jnp.float32)
    jax.block_until_ready((y3, y4))
    s3, s4 = reference_forward(x1b, x2b, params2, jnp.float32)
    assert jnp.allclose(y3, s3, atol=1e-3, rtol=1e-3)
    assert jnp.allclose(y4, s4, atol=1e-3, rtol=1e-3)

    print("KERNEL_OK")
</pallas_src>

<mosaic_0001>
module attributes {stable_mosaic.version = 11 : i64} {
  func.func @kernel(%arg0: i32, %arg1: memref<1x4x256xf32, #tpu.memory_space<vmem>>, %arg2: memref<1x4x256xf32, #tpu.memory_space<vmem>>, %arg3: memref<1x256xi32, #tpu.memory_space<vmem>>, %arg4: memref<2x4x1xf32, #tpu.memory_space<vmem>>, %arg5: memref<2x4x1xf32, #tpu.memory_space<vmem>>, %arg6: memref<2x4x1xf32, #tpu.memory_space<vmem>>, %arg7: memref<2x4x1xf32, #tpu.memory_space<vmem>>, %arg8: memref<2x4x1xf32, #tpu.memory_space<vmem>>, %arg9: memref<2x4x1xf32, #tpu.memory_space<vmem>>, %arg10: memref<2x4x1xf32, #tpu.memory_space<vmem>>, %arg11: memref<2x4x1xf32, #tpu.memory_space<vmem>>, %arg12: memref<4x4xf32, #tpu.memory_space<vmem>>, %arg13: memref<4x4xf32, #tpu.memory_space<vmem>>, %arg14: memref<4x1xf32, #tpu.memory_space<vmem>>, %arg15: memref<9x4x4xf32, #tpu.memory_space<vmem>>, %arg16: memref<4x1xf32, #tpu.memory_space<vmem>>, %arg17: memref<4x4xf32, #tpu.memory_space<vmem>>, %arg18: memref<4x4xf32, #tpu.memory_space<vmem>>, %arg19: memref<4x1xf32, #tpu.memory_space<vmem>>, %arg20: memref<4x4xf32, #tpu.memory_space<vmem>>, %arg21: memref<4x4xf32, #tpu.memory_space<vmem>>, %arg22: memref<4x1xf32, #tpu.memory_space<vmem>>, %arg23: memref<9x4x4xf32, #tpu.memory_space<vmem>>, %arg24: memref<4x1xf32, #tpu.memory_space<vmem>>, %arg25: memref<1x4x256xf32, #tpu.memory_space<vmem>>, %arg26: memref<1x4x256xf32, #tpu.memory_space<vmem>>) attributes {dimension_semantics = [#tpu.dimension_semantics<parallel>], iteration_bounds = array<i64: 2>, scalar_prefetch = 0 : i64, scratch_operands = 0 : i64, tpu.core_type = #tpu.core_type<tc>, window_params = [{transform_indices = @transform_0, window_bounds = array<i64: 1, 4, 256>}, {transform_indices = @transform_1, window_bounds = array<i64: 1, 4, 256>}, {pipeline_mode = #tpu.pipeline_mode<synchronous>, transform_indices = @transform_2, window_bounds = array<i64: 1, 256>}, {pipeline_mode = #tpu.pipeline_mode<synchronous>, transform_indices = @transform_3, window_bounds = array<i64: 2, 4, 1>}, {pipeline_mode = #tpu.pipeline_mode<synchronous>, transform_indices = @transform_4, window_bounds = array<i64: 2, 4, 1>}, {pipeline_mode = #tpu.pipeline_mode<synchronous>, transform_indices = @transform_5, window_bounds = array<i64: 2, 4, 1>}, {pipeline_mode = #tpu.pipeline_mode<synchronous>, transform_indices = @transform_6, window_bounds = array<i64: 2, 4, 1>}, {pipeline_mode = #tpu.pipeline_mode<synchronous>, transform_indices = @transform_7, window_bounds = array<i64: 2, 4, 1>}, {pipeline_mode = #tpu.pipeline_mode<synchronous>, transform_indices = @transform_8, window_bounds = array<i64: 2, 4, 1>}, {pipeline_mode = #tpu.pipeline_mode<synchronous>, transform_indices = @transform_9, window_bounds = array<i64: 2, 4, 1>}, {pipeline_mode = #tpu.pipeline_mode<synchronous>, transform_indices = @transform_10, window_bounds = array<i64: 2, 4, 1>}, {pipeline_mode = #tpu.pipeline_mode<synchronous>, transform_indices = @transform_11, window_bounds = array<i64: 4, 4>}, {pipeline_mode = #tpu.pipeline_mode<synchronous>, transform_indices = @transform_12, window_bounds = array<i64: 4, 4>}, {pipeline_mode = #tpu.pipeline_mode<synchronous>, transform_indices = @transform_13, window_bounds = array<i64: 4, 1>}, {pipeline_mode = #tpu.pipeline_mode<synchronous>, transform_indices = @transform_14, window_bounds = array<i64: 9, 4, 4>}, {pipeline_mode = #tpu.pipeline_mode<synchronous>, transform_indices = @transform_15, window_bounds = array<i64: 4, 1>}, {pipeline_mode = #tpu.pipeline_mode<synchronous>, transform_indices = @transform_16, window_bounds = array<i64: 4, 4>}, {pipeline_mode = #tpu.pipeline_mode<synchronous>, transform_indices = @transform_17, window_bounds = array<i64: 4, 4>}, {pipeline_mode = #tpu.pipeline_mode<synchronous>, transform_indices = @transform_18, window_bounds = array<i64: 4, 1>}, {pipeline_mode = #tpu.pipeline_mode<synchronous>, transform_indices = @transform_19, window_bounds = array<i64: 4, 4>}, {pipeline_mode = #tpu.pipeline_mode<synchronous>, transform_indices = @transform_20, window_bounds = array<i64: 4, 4>}, {pipeline_mode = #tpu.pipeline_mode<synchronous>, transform_indices = @transform_21, window_bounds = array<i64: 4, 1>}, {pipeline_mode = #tpu.pipeline_mode<synchronous>, transform_indices = @transform_22, window_bounds = array<i64: 9, 4, 4>}, {pipeline_mode = #tpu.pipeline_mode<synchronous>, transform_indices = @transform_23, window_bounds = array<i64: 4, 1>}, {transform_indices = @transform_24, window_bounds = array<i64: 1, 4, 256>}, {transform_indices = @transform_25, window_bounds = array<i64: 1, 4, 256>}]} {
    %0 = tpu.iota {dimensions = array<i32: 1>} : vector<4x256xi32>
    %c0 = arith.constant 0 : index
    %c0_0 = arith.constant 0 : index
    %1 = vector.load %arg3[%c0, %c0_0] : memref<1x256xi32, #tpu.memory_space<vmem>>, vector<1x256xi32>
    %2 = vector.shape_cast %1 : vector<1x256xi32> to vector<1x256xi32>
    %3 = vector.broadcast %2 : vector<1x256xi32> to vector<4x256xi32>
    %c16_i32 = arith.constant 16 : i32
    %4 = vector.broadcast %c16_i32 : i32 to vector<4x256xi32>
    %5 = arith.cmpi sge, %0, %4 : vector<4x256xi32>
    %c240_i32 = arith.constant 240 : i32
    %6 = vector.broadcast %c240_i32 : i32 to vector<4x256xi32>
    %7 = arith.cmpi slt, %0, %6 : vector<4x256xi32>
    %c1_i32 = arith.constant 1 : i32
    %8 = vector.broadcast %c1_i32 : i32 to vector<4x256xi32>
    %9 = arith.cmpi sge, %3, %8 : vector<4x256xi32>
    %c15_i32 = arith.constant 15 : i32
    %10 = vector.broadcast %c15_i32 : i32 to vector<4x256xi32>
    %11 = arith.cmpi slt, %3, %10 : vector<4x256xi32>
    %c32_i32 = arith.constant 32 : i32
    %12 = vector.broadcast %c32_i32 : i32 to vector<4x256xi32>
    %13 = arith.cmpi sge, %0, %12 : vector<4x256xi32>
    %c224_i32 = arith.constant 224 : i32
    %14 = vector.broadcast %c224_i32 : i32 to vector<4x256xi32>
    %15 = arith.cmpi slt, %0, %14 : vector<4x256xi32>
    %c2_i32 = arith.constant 2 : i32
    %16 = vector.broadcast %c2_i32 : i32 to vector<4x256xi32>
    %17 = arith.cmpi sge, %3, %16 : vector<4x256xi32>
    %c14_i32 = arith.constant 14 : i32
    %18 = vector.broadcast %c14_i32 : i32 to vector<4x256xi32>
    %19 = arith.cmpi slt, %3, %18 : vector<4x256xi32>
    %c0_1 = arith.constant 0 : index
    %c0_2 = arith.constant 0 : index
    %c0_3 = arith.constant 0 : index
    %20 = vector.load %arg1[%c0_1, %c0_2, %c0_3] : memref<1x4x256xf32, #tpu.memory_space<vmem>>, vector<1x4x256xf32>
    %21 = vector.shape_cast %20 : vector<1x4x256xf32> to vector<4x256xf32>
    %c0_4 = arith.constant 0 : index
    %c0_5 = arith.constant 0 : index
    %c0_6 = arith.constant 0 : index
    %22 = vector.load %arg2[%c0_4, %c0_5, %c0_6] : memref<1x4x256xf32, #tpu.memory_space<vmem>>, vector<1x4x256xf32>
    %23 = vector.shape_cast %22 : vector<1x4x256xf32> to vector<4x256xf32>
    %c0_7 = arith.constant 0 : index
    %c0_8 = arith.constant 0 : index
    %c0_9 = arith.constant 0 : index
    %24 = vector.load %arg7[%c0_7, %c0_8, %c0_9] : memref<2x4x1xf32, #tpu.memory_space<vmem>>, vector<1x4x1xf32>
    %25 = vector.shape_cast %24 : vector<1x4x1xf32> to vector<4x1xf32>
    %26 = vector.broadcast %25 : vector<4x1xf32> to vector<4x256xf32>
    %27 = arith.mulf %21, %26 : vector<4x256xf32>
    %c1 = arith.constant 1 : index
    %c0_10 = arith.constant 0 : index
    %c0_11 = arith.constant 0 : index
    %28 = vector.load %arg7[%c1, %c0_10, %c0_11] : memref<2x4x1xf32, #tpu.memory_space<vmem>>, vector<1x4x1xf32>
    %29 = vector.shape_cast %28 : vector<1x4x1xf32> to vector<4x1xf32>
    %30 = vector.broadcast %29 : vector<4x1xf32> to vector<4x256xf32>
    %31 = arith.addf %27, %30 : vector<4x256xf32>
    %cst = arith.constant 0.000000e+00 : f32
    %32 = vector.broadcast %cst : f32 to vector<4x256xf32>
    %33 = arith.maximumf %31, %32 : vector<4x256xf32>
    %c0_12 = arith.constant 0 : index
    %c0_13 = arith.constant 0 : index
    %c0_14 = arith.constant 0 : index
    %34 = vector.load %arg8[%c0_12, %c0_13, %c0_14] : memref<2x4x1xf32, #tpu.memory_space<vmem>>, vector<1x4x1xf32>
    %35 = vector.shape_cast %34 : vector<1x4x1xf32> to vector<4x1xf32>
    %36 = vector.broadcast %35 : vector<4x1xf32> to vector<4x256xf32>
    %37 = arith.mulf %23, %36 : vector<4x256xf32>
    %c1_15 = arith.constant 1 : index
    %c0_16 = arith.constant 0 : index
    %c0_17 = arith.constant 0 : index
    %38 = vector.load %arg8[%c1_15, %c0_16, %c0_17] : memref<2x4x1xf32, #tpu.memory_space<vmem>>, vector<1x4x1xf32>
    %39 = vector.shape_cast %38 : vector<1x4x1xf32> to vector<4x1xf32>
    %40 = vector.broadcast %39 : vector<4x1xf32> to vector<4x256xf32>
    %41 = arith.addf %37, %40 : vector<4x256xf32>
    %cst_18 = arith.constant 0.000000e+00 : f32
    %42 = vector.broadcast %cst_18 : f32 to vector<4x256xf32>
    %43 = arith.maximumf %41, %42 : vector<4x256xf32>
    %c0_19 = arith.constant 0 : index
    %c0_20 = arith.constant 0 : index
    %44 = vector.load %arg17[%c0_19, %c0_20] : memref<4x4xf32, #tpu.memory_space<vmem>>, vector<4x4xf32>
    %cst_21 = arith.constant dense<0.000000e+00> : vector<4x256xf32>
    %45 = tpu.matmul %44, %33, %cst_21 {dimension_numbers = #tpu.dot_dimension_numbers<[1], [0], [0], [1], [0, 0, 1, 1], [], []>} : vector<4x4xf32>, vector<4x256xf32>, vector<4x256xf32> -> vector<4x256xf32>
    %c0_22 = arith.constant 0 : index
    %c0_23 = arith.constant 0 : index
    %46 = vector.load %arg18[%c0_22, %c0_23] : memref<4x4xf32, #tpu.memory_space<vmem>>, vector<4x4xf32>
    %cst_24 = arith.constant dense<0.000000e+00> : vector<4x256xf32>
    %47 = tpu.matmul %46, %43, %cst_24 {dimension_numbers = #tpu.dot_dimension_numbers<[1], [0], [0], [1], [0, 0, 1, 1], [], []>} : vector<4x4xf32>, vector<4x256xf32>, vector<4x256xf32> -> vector<4x256xf32>
    %48 = arith.addf %45, %47 : vector<4x256xf32>
    %c0_25 = arith.constant 0 : index
    %c0_26 = arith.constant 0 : index
    %49 = vector.load %arg19[%c0_25, %c0_26] : memref<4x1xf32, #tpu.memory_space<vmem>>, vector<4x1xf32>
    %50 = vector.broadcast %49 : vector<4x1xf32> to vector<4x256xf32>
    %51 = arith.addf %48, %50 : vector<4x256xf32>
    %c0_27 = arith.constant 0 : index
    %c0_28 = arith.constant 0 : index
    %c0_29 = arith.constant 0 : index
    %52 = vector.load %arg4[%c0_27, %c0_28, %c0_29] : memref<2x4x1xf32, #tpu.memory_space<vmem>>, vector<1x4x1xf32>
    %53 = vector.shape_cast %52 : vector<1x4x1xf32> to vector<4x1xf32>
    %54 = vector.broadcast %53 : vector<4x1xf32> to vector<4x256xf32>
    %55 = arith.mulf %21, %54 : vector<4x256xf32>
    %c1_30 = arith.constant 1 : index
    %c0_31 = arith.constant 0 : index
    %c0_32 = arith.constant 0 : index
    %56 = vector.load %arg4[%c1_30, %c0_31, %c0_32] : memref<2x4x1xf32, #tpu.memory_space<vmem>>, vector<1x4x1xf32>
    %57 = vector.shape_cast %56 : vector<1x4x1xf32> to vector<4x1xf32>
    %58 = vector.broadcast %57 : vector<4x1xf32> to vector<4x256xf32>
    %59 = arith.addf %55, %58 : vector<4x256xf32>
    %cst_33 = arith.constant 0.000000e+00 : f32
    %60 = vector.broadcast %cst_33 : f32 to vector<4x256xf32>
    %61 = arith.maximumf %59, %60 : vector<4x256xf32>
    %c0_34 = arith.constant 0 : index
    %c0_35 = arith.constant 0 : index
    %c0_36 = arith.constant 0 : index
    %62 = vector.load %arg5[%c0_34, %c0_35, %c0_36] : memref<2x4x1xf32, #tpu.memory_space<vmem>>, vector<1x4x1xf32>
    %63 = vector.shape_cast %62 : vector<1x4x1xf32> to vector<4x1xf32>
    %64 = vector.broadcast %63 : vector<4x1xf32> to vector<4x256xf32>
    %65 = arith.mulf %23, %64 : vector<4x256xf32>
    %c1_37 = arith.constant 1 : index
    %c0_38 = arith.constant 0 : index
    %c0_39 = arith.constant 0 : index
    %66 = vector.load %arg5[%c1_37, %c0_38, %c0_39] : memref<2x4x1xf32, #tpu.memory_space<vmem>>, vector<1x4x1xf32>
    %67 = vector.shape_cast %66 : vector<1x4x1xf32> to vector<4x1xf32>
    %68 = vector.broadcast %67 : vector<4x1xf32> to vector<4x256xf32>
    %69 = arith.addf %65, %68 : vector<4x256xf32>
    %cst_40 = arith.constant 0.000000e+00 : f32
    %70 = vector.broadcast %cst_40 : f32 to vector<4x256xf32>
    %71 = arith.maximumf %69, %70 : vector<4x256xf32>
    %c0_41 = arith.constant 0 : index
    %c0_42 = arith.constant 0 : index
    %72 = vector.load %arg12[%c0_41, %c0_42] : memref<4x4xf32, #tpu.memory_space<vmem>>, vector<4x4xf32>
    %cst_43 = arith.constant dense<0.000000e+00> : vector<4x256xf32>
    %73 = tpu.matmul %72, %61, %cst_43 {dimension_numbers = #tpu.dot_dimension_numbers<[1], [0], [0], [1], [0, 0, 1, 1], [], []>} : vector<4x4xf32>, vector<4x256xf32>, vector<4x256xf32> -> vector<4x256xf32>
    %c0_44 = arith.constant 0 : index
    %c0_45 = arith.constant 0 : index
    %74 = vector.load %arg13[%c0_44, %c0_45] : memref<4x4xf32, #tpu.memory_space<vmem>>, vector<4x4xf32>
    %cst_46 = arith.constant dense<0.000000e+00> : vector<4x256xf32>
    %75 = tpu.matmul %74, %71, %cst_46 {dimension_numbers = #tpu.dot_dimension_numbers<[1], [0], [0], [1], [0, 0, 1, 1], [], []>} : vector<4x4xf32>, vector<4x256xf32>, vector<4x256xf32> -> vector<4x256xf32>
    %76 = arith.addf %73, %75 : vector<4x256xf32>
    %c0_47 = arith.constant 0 : index
    %c0_48 = arith.constant 0 : index
    %77 = vector.load %arg14[%c0_47, %c0_48] : memref<4x1xf32, #tpu.memory_space<vmem>>, vector<4x1xf32>
    %78 = vector.broadcast %77 : vector<4x1xf32> to vector<4x256xf32>
    %79 = arith.addf %76, %78 : vector<4x256xf32>
    %c0_49 = arith.constant 0 : index
    %c0_50 = arith.constant 0 : index
    %c0_51 = arith.constant 0 : index
    %80 = vector.load %arg6[%c0_49, %c0_50, %c0_51] : memref<2x4x1xf32, #tpu.memory_space<vmem>>, vector<1x4x1xf32>
    %81 = vector.shape_cast %80 : vector<1x4x1xf32> to vector<4x1xf32>
    %82 = vector.broadcast %81 : vector<4x1xf32> to vector<4x256xf32>
    %83 = arith.mulf %79, %82 : vector<4x256xf32>
    %c1_52 = arith.constant 1 : index
    %c0_53 = arith.constant 0 : index
    %c0_54 = arith.constant 0 : index
    %84 = vector.load %arg6[%c1_52, %c0_53, %c0_54] : memref<2x4x1xf32, #tpu.memory_space<vmem>>, vector<1x4x1xf32>
    %85 = vector.shape_cast %84 : vector<1x4x1xf32> to vector<4x1xf32>
    %86 = vector.broadcast %85 : vector<4x1xf32> to vector<4x256xf32>
    %87 = arith.addf %83, %86 : vector<4x256xf32>
    %cst_55 = arith.constant 0.000000e+00 : f32
    %88 = vector.broadcast %cst_55 : f32 to vector<4x256xf32>
    %89 = arith.maximumf %87, %88 : vector<4x256xf32>
    %c17_i32 = arith.constant 17 : i32
    %90 = tpu.dynamic_rotate %89 by %c17_i32 dim 1 : vector<4x256xf32>, i32 -> vector<4x256xf32>
    %91 = arith.andi %5, %9 : vector<4x256xi1>
    %cst_56 = arith.constant 0.000000e+00 : f32
    %92 = vector.broadcast %cst_56 : f32 to vector<4x256xf32>
    %93 = arith.select %91, %90, %92 : vector<4x256xi1>, vector<4x256xf32>
    %c0_57 = arith.constant 0 : index
    %c0_58 = arith.constant 0 : index
    %c0_59 = arith.constant 0 : index
    %94 = vector.load %arg15[%c0_57, %c0_58, %c0_59] : memref<9x4x4xf32, #tpu.memory_space<vmem>>, vector<1x4x4xf32>
    %95 = vector.shape_cast %94 : vector<1x4x4xf32> to vector<4x4xf32>
    %cst_60 = arith.constant dense<0.000000e+00> : vector<4x256xf32>
    %96 = tpu.matmul %95, %93, %cst_60 {dimension_numbers = #tpu.dot_dimension_numbers<[1], [0], [0], [1], [0, 0, 1, 1], [], []>} : vector<4x4xf32>, vector<4x256xf32>, vector<4x256xf32> -> vector<4x256xf32>
    %c16_i32_61 = arith.constant 16 : i32
    %97 = tpu.dynamic_rotate %89 by %c16_i32_61 dim 1 : vector<4x256xf32>, i32 -> vector<4x256xf32>
    %cst_62 = arith.constant 0.000000e+00 : f32
    %98 = vector.broadcast %cst_62 : f32 to vector<4x256xf32>
    %99 = arith.select %5, %97, %98 : vector<4x256xi1>, vector<4x256xf32>
    %c1_63 = arith.constant 1 : index
    %c0_64 = arith.constant 0 : index
    %c0_65 = arith.constant 0 : index
    %100 = vector.load %arg15[%c1_63, %c0_64, %c0_65] : memref<9x4x4xf32, #tpu.memory_space<vmem>>, vector<1x4x4xf32>
    %101 = vector.shape_cast %100 : vector<1x4x4xf32> to vector<4x4xf32>
    %cst_66 = arith.constant dense<0.000000e+00> : vector<4x256xf32>
    %102 = tpu.matmul %101, %99, %cst_66 {dimension_numbers = #tpu.dot_dimension_numbers<[1], [0], [0], [1], [0, 0, 1, 1], [], []>} : vector<4x4xf32>, vector<4x256xf32>, vector<4x256xf32> -> vector<4x256xf32>
    %103 = arith.addf %96, %102 : vector<4x256xf32>
    %c15_i32_67 = arith.constant 15 : i32
    %104 = tpu.dynamic_rotate %89 by %c15_i32_67 dim 1 : vector<4x256xf32>, i32 -> vector<4x256xf32>
    %105 = arith.andi %5, %11 : vector<4x256xi1>
    %cst_68 = arith.constant 0.000000e+00 : f32
    %106 = vector.broadcast %cst_68 : f32 to vector<4x256xf32>
    %107 = arith.select %105, %104, %106 : vector<4x256xi1>, vector<4x256xf32>
    %c2 = arith.constant 2 : index
    %c0_69 = arith.constant 0 : index
    %c0_70 = arith.constant 0 : index
    %108 = vector.load %arg15[%c2, %c0_69, %c0_70] : memref<9x4x4xf32, #tpu.memory_space<vmem>>, vector<1x4x4xf32>
    %109 = vector.shape_cast %108 : vector<1x4x4xf32> to vector<4x4xf32>
    %cst_71 = arith.constant dense<0.000000e+00> : vector<4x256xf32>
    %110 = tpu.matmul %109, %107, %cst_71 {dimension_numbers = #tpu.dot_dimension_numbers<[1], [0], [0], [1], [0, 0, 1, 1], [], []>} : vector<4x4xf32>, vector<4x256xf32>, vector<4x256xf32> -> vector<4x256xf32>
    %111 = arith.addf %103, %110 : vector<4x256xf32>
    %c1_i32_72 = arith.constant 1 : i32
    %112 = tpu.dynamic_rotate %89 by %c1_i32_72 dim 1 : vector<4x256xf32>, i32 -> vector<4x256xf32>
    %cst_73 = arith.constant 0.000000e+00 : f32
    %113 = vector.broadcast %cst_73 : f32 to vector<4x256xf32>
    %114 = arith.select %9, %112, %113 : vector<4x256xi1>, vector<4x256xf32>
    %c3 = arith.constant 3 : index
    %c0_74 = arith.constant 0 : index
    %c0_75 = arith.constant 0 : index
    %115 = vector.load %arg15[%c3, %c0_74, %c0_75] : memref<9x4x4xf32, #tpu.memory_space<vmem>>, vector<1x4x4xf32>
    %116 = vector.shape_cast %115 : vector<1x4x4xf32> to vector<4x4xf32>
    %cst_76 = arith.constant dense<0.000000e+00> : vector<4x256xf32>
    %117 = tpu.matmul %116, %114, %cst_76 {dimension_numbers = #tpu.dot_dimension_numbers<[1], [0], [0], [1], [0, 0, 1, 1], [], []>} : vector<4x4xf32>, vector<4x256xf32>, vector<4x256xf32> -> vector<4x256xf32>
    %118 = arith.addf %111, %117 : vector<4x256xf32>
    %c4 = arith.constant 4 : index
    %c0_77 = arith.constant 0 : index
    %c0_78 = arith.constant 0 : index
    %119 = vector.load %arg15[%c4, %c0_77, %c0_78] : memref<9x4x4xf32, #tpu.memory_space<vmem>>, vector<1x4x4xf32>
    %120 = vector.shape_cast %119 : vector<1x4x4xf32> to vector<4x4xf32>
    %cst_79 = arith.constant dense<0.000000e+00> : vector<4x256xf32>
    %121 = tpu.matmul %120, %89, %cst_79 {dimension_numbers = #tpu.dot_dimension_numbers<[1], [0], [0], [1], [0, 0, 1, 1], [], []>} : vector<4x4xf32>, vector<4x256xf32>, vector<4x256xf32> -> vector<4x256xf32>
    %122 = arith.addf %118, %121 : vector<4x256xf32>
    %c255_i32 = arith.constant 255 : i32
    %123 = tpu.dynamic_rotate %89 by %c255_i32 dim 1 : vector<4x256xf32>, i32 -> vector<4x256xf32>
    %cst_80 = arith.constant 0.000000e+00 : f32
    %124 = vector.broadcast %cst_80 : f32 to vector<4x256xf32>
    %125 = arith.select %11, %123, %124 : vector<4x256xi1>, vector<4x256xf32>
    %c5 = arith.constant 5 : index
    %c0_81 = arith.constant 0 : index
    %c0_82 = arith.constant 0 : index
    %126 = vector.load %arg15[%c5, %c0_81, %c0_82] : memref<9x4x4xf32, #tpu.memory_space<vmem>>, vector<1x4x4xf32>
    %127 = vector.shape_cast %126 : vector<1x4x4xf32> to vector<4x4xf32>
    %cst_83 = arith.constant dense<0.000000e+00> : vector<4x256xf32>
    %128 = tpu.matmul %127, %125, %cst_83 {dimension_numbers = #tpu.dot_dimension_numbers<[1], [0], [0], [1], [0, 0, 1, 1], [], []>} : vector<4x4xf32>, vector<4x256xf32>, vector<4x256xf32> -> vector<4x256xf32>
    %129 = arith.addf %122, %128 : vector<4x256xf32>
    %c241_i32 = arith.constant 241 : i32
    %130 = tpu.dynamic_rotate %89 by %c241_i32 dim 1 : vector<4x256xf32>, i32 -> vector<4x256xf32>
    %131 = arith.andi %7, %9 : vector<4x256xi1>
    %cst_84 = arith.constant 0.000000e+00 : f32
    %132 = vector.broadcast %cst_84 : f32 to vector<4x256xf32>
    %133 = arith.select %131, %130, %132 : vector<4x256xi1>, vector<4x256xf32>
    %c6 = arith.constant 6 : index
    %c0_85 = arith.constant 0 : index
    %c0_86 = arith.constant 0 : index
    %134 = vector.load %arg15[%c6, %c0_85, %c0_86] : memref<9x4x4xf32, #tpu.memory_space<vmem>>, vector<1x4x4xf32>
    %135 = vector.shape_cast %134 : vector<1x4x4xf32> to vector<4x4xf32>
    %cst_87 = arith.constant dense<0.000000e+00> : vector<4x256xf32>
    %136 = tpu.matmul %135, %133, %cst_87 {dimension_numbers = #tpu.dot_dimension_numbers<[1], [0], [0], [1], [0, 0, 1, 1], [], []>} : vector<4x4xf32>, vector<4x256xf32>, vector<4x256xf32> -> vector<4x256xf32>
    %137 = arith.addf %129, %136 : vector<4x256xf32>
    %c240_i32_88 = arith.constant 240 : i32
    %138 = tpu.dynamic_rotate %89 by %c240_i32_88 dim 1 : vector<4x256xf32>, i32 -> vector<4x256xf32>
    %cst_89 = arith.constant 0.000000e+00 : f32
    %139 = vector.broadcast %cst_89 : f32 to vector<4x256xf32>
    %140 = arith.select %7, %138, %139 : vector<4x256xi1>, vector<4x256xf32>
    %c7 = arith.constant 7 : index
    %c0_90 = arith.constant 0 : index
    %c0_91 = arith.constant 0 : index
    %141 = vector.load %arg15[%c7, %c0_90, %c0_91] : memref<9x4x4xf32, #tpu.memory_space<vmem>>, vector<1x4x4xf32>
    %142 = vector.shape_cast %141 : vector<1x4x4xf32> to vector<4x4xf32>
    %cst_92 = arith.constant dense<0.000000e+00> : vector<4x256xf32>
    %143 = tpu.matmul %142, %140, %cst_92 {dimension_numbers = #tpu.dot_dimension_numbers<[1], [0], [0], [1], [0, 0, 1, 1], [], []>} : vector<4x4xf32>, vector<4x256xf32>, vector<4x256xf32> -> vector<4x256xf32>
    %144 = arith.addf %137, %143 : vector<4x256xf32>
    %c239_i32 = arith.constant 239 : i32
    %145 = tpu.dynamic_rotate %89 by %c239_i32 dim 1 : vector<4x256xf32>, i32 -> vector<4x256xf32>
    %146 = arith.andi %7, %11 : vector<4x256xi1>
    %cst_93 = arith.constant 0.000000e+00 : f32
    %147 = vector.broadcast %cst_93 : f32 to vector<4x256xf32>
    %148 = arith.select %146, %145, %147 : vector<4x256xi1>, vector<4x256xf32>
    %c8 = arith.constant 8 : index
    %c0_94 = arith.constant 0 : index
    %c0_95 = arith.constant 0 : index
    %149 = vector.load %arg15[%c8, %c0_94, %c0_95] : memref<9x4x4xf32, #tpu.memory_space<vmem>>, vector<1x4x4xf32>
    %150 = vector.shape_cast %149 : vector<1x4x4xf32> to vector<4x4xf32>
    %cst_96 = arith.constant dense<0.000000e+00> : vector<4x256xf32>
    %151 = tpu.matmul %150, %148, %cst_96 {dimension_numbers = #tpu.dot_dimension_numbers<[1], [0], [0], [1], [0, 0, 1, 1], [], []>} : vector<4x4xf32>, vector<4x256xf32>, vector<4x256xf32> -> vector<4x256xf32>
    %152 = arith.addf %144, %151 : vector<4x256xf32>
    %c0_97 = arith.constant 0 : index
    %c0_98 = arith.constant 0 : index
    %153 = vector.load %arg16[%c0_97, %c0_98] : memref<4x1xf32, #tpu.memory_space<vmem>>, vector<4x1xf32>
    %154 = vector.broadcast %153 : vector<4x1xf32> to vector<4x256xf32>
    %155 = arith.addf %152, %154 : vector<4x256xf32>
    %c0_99 = arith.constant 0 : index
    %c0_100 = arith.constant 0 : index
    %c0_101 = arith.constant 0 : index
    %156 = vector.load %arg9[%c0_99, %c0_100, %c0_101] : memref<2x4x1xf32, #tpu.memory_space<vmem>>, vector<1x4x1xf32>
    %157 = vector.shape_cast %156 : vector<1x4x1xf32> to vector<4x1xf32>
    %158 = vector.broadcast %157 : vector<4x1xf32> to vector<4x256xf32>
    %159 = arith.mulf %23, %158 : vector<4x256xf32>
    %c1_102 = arith.constant 1 : index
    %c0_103 = arith.constant 0 : index
    %c0_104 = arith.constant 0 : index
    %160 = vector.load %arg9[%c1_102, %c0_103, %c0_104] : memref<2x4x1xf32, #tpu.memory_space<vmem>>, vector<1x4x1xf32>
    %161 = vector.shape_cast %160 : vector<1x4x1xf32> to vector<4x1xf32>
    %162 = vector.broadcast %161 : vector<4x1xf32> to vector<4x256xf32>
    %163 = arith.addf %159, %162 : vector<4x256xf32>
    %cst_105 = arith.constant 0.000000e+00 : f32
    %164 = vector.broadcast %cst_105 : f32 to vector<4x256xf32>
    %165 = arith.maximumf %163, %164 : vector<4x256xf32>
    %c0_106 = arith.constant 0 : index
    %c0_107 = arith.constant 0 : index
    %c0_108 = arith.constant 0 : index
    %166 = vector.load %arg10[%c0_106, %c0_107, %c0_108] : memref<2x4x1xf32, #tpu.memory_space<vmem>>, vector<1x4x1xf32>
    %167 = vector.shape_cast %166 : vector<1x4x1xf32> to vector<4x1xf32>
    %168 = vector.broadcast %167 : vector<4x1xf32> to vector<4x256xf32>
    %169 = arith.mulf %155, %168 : vector<4x256xf32>
    %c1_109 = arith.constant 1 : index
    %c0_110 = arith.constant 0 : index
    %c0_111 = arith.constant 0 : index
    %170 = vector.load %arg10[%c1_109, %c0_110, %c0_111] : memref<2x4x1xf32, #tpu.memory_space<vmem>>, vector<1x4x1xf32>
    %171 = vector.shape_cast %170 : vector<1x4x1xf32> to vector<4x1xf32>
    %172 = vector.broadcast %171 : vector<4x1xf32> to vector<4x256xf32>
    %173 = arith.addf %169, %172 : vector<4x256xf32>
    %cst_112 = arith.constant 0.000000e+00 : f32
    %174 = vector.broadcast %cst_112 : f32 to vector<4x256xf32>
    %175 = arith.maximumf %173, %174 : vector<4x256xf32>
    %c0_113 = arith.constant 0 : index
    %c0_114 = arith.constant 0 : index
    %176 = vector.load %arg20[%c0_113, %c0_114] : memref<4x4xf32, #tpu.memory_space<vmem>>, vector<4x4xf32>
    %cst_115 = arith.constant dense<0.000000e+00> : vector<4x256xf32>
    %177 = tpu.matmul %176, %165, %cst_115 {dimension_numbers = #tpu.dot_dimension_numbers<[1], [0], [0], [1], [0, 0, 1, 1], [], []>} : vector<4x4xf32>, vector<4x256xf32>, vector<4x256xf32> -> vector<4x256xf32>
    %c0_116 = arith.constant 0 : index
    %c0_117 = arith.constant 0 : index
    %178 = vector.load %arg21[%c0_116, %c0_117] : memref<4x4xf32, #tpu.memory_space<vmem>>, vector<4x4xf32>
    %cst_118 = arith.constant dense<0.000000e+00> : vector<4x256xf32>
    %179 = tpu.matmul %178, %175, %cst_118 {dimension_numbers = #tpu.dot_dimension_numbers<[1], [0], [0], [1], [0, 0, 1, 1], [], []>} : vector<4x4xf32>, vector<4x256xf32>, vector<4x256xf32> -> vector<4x256xf32>
    %180 = arith.addf %177, %179 : vector<4x256xf32>
    %c0_119 = arith.constant 0 : index
    %c0_120 = arith.constant 0 : index
    %181 = vector.load %arg22[%c0_119, %c0_120] : memref<4x1xf32, #tpu.memory_space<vmem>>, vector<4x1xf32>
    %182 = vector.broadcast %181 : vector<4x1xf32> to vector<4x256xf32>
    %183 = arith.addf %180, %182 : vector<4x256xf32>
    %c0_121 = arith.constant 0 : index
    %c0_122 = arith.constant 0 : index
    %c0_123 = arith.constant 0 : index
    %184 = vector.load %arg11[%c0_121, %c0_122, %c0_123] : memref<2x4x1xf32, #tpu.memory_space<vmem>>, vector<1x4x1xf32>
    %185 = vector.shape_cast %184 : vector<1x4x1xf32> to vector<4x1xf32>
    %186 = vector.broadcast %185 : vector<4x1xf32> to vector<4x256xf32>
    %187 = arith.mulf %183, %186 : vector<4x256xf32>
    %c1_124 = arith.constant 1 : index
    %c0_125 = arith.constant 0 : index
    %c0_126 = arith.constant 0 : index
    %188 = vector.load %arg11[%c1_124, %c0_125, %c0_126] : memref<2x4x1xf32, #tpu.memory_space<vmem>>, vector<1x4x1xf32>
    %189 = vector.shape_cast %188 : vector<1x4x1xf32> to vector<4x1xf32>
    %190 = vector.broadcast %189 : vector<4x1xf32> to vector<4x256xf32>
    %191 = arith.addf %187, %190 : vector<4x256xf32>
    %cst_127 = arith.constant 0.000000e+00 : f32
    %192 = vector.broadcast %cst_127 : f32 to vector<4x256xf32>
    %193 = arith.maximumf %191, %192 : vector<4x256xf32>
    %c34_i32 = arith.constant 34 : i32
    %194 = tpu.dynamic_rotate %193 by %c34_i32 dim 1 : vector<4x256xf32>, i32 -> vector<4x256xf32>
    %195 = arith.andi %13, %17 : vector<4x256xi1>
    %cst_128 = arith.constant 0.000000e+00 : f32
    %196 = vector.broadcast %cst_128 : f32 to vector<4x256xf32>
    %197 = arith.select %195, %194, %196 : vector<4x256xi1>, vector<4x256xf32>
    %c0_129 = arith.constant 0 : index
    %c0_130 = arith.constant 0 : index
    %c0_131 = arith.constant 0 : index
    %198 = vector.load %arg23[%c0_129, %c0_130, %c0_131] : memref<9x4x4xf32, #tpu.memory_space<vmem>>, vector<1x4x4xf32>
    %199 = vector.shape_cast %198 : vector<1x4x4xf32> to vector<4x4xf32>
    %cst_132 = arith.constant dense<0.000000e+00> : vector<4x256xf32>
    %200 = tpu.matmul %199, %197, %cst_132 {dimension_numbers = #tpu.dot_dimension_numbers<[1], [0], [0], [1], [0, 0, 1, 1], [], []>} : vector<4x4xf32>, vector<4x256xf32>, vector<4x256xf32> -> vector<4x256xf32>
    %c32_i32_133 = arith.constant 32 : i32
    %201 = tpu.dynamic_rotate %193 by %c32_i32_133 dim 1 : vector<4x256xf32>, i32 -> vector<4x256xf32>
    %cst_134 = arith.constant 0.000000e+00 : f32
    %202 = vector.broadcast %cst_134 : f32 to vector<4x256xf32>
    %203 = arith.select %13, %201, %202 : vector<4x256xi1>, vector<4x256xf32>
    %c1_135 = arith.constant 1 : index
    %c0_136 = arith.constant 0 : index
    %c0_137 = arith.constant 0 : index
    %204 = vector.load %arg23[%c1_135, %c0_136, %c0_137] : memref<9x4x4xf32, #tpu.memory_space<vmem>>, vector<1x4x4xf32>
    %205 = vector.shape_cast %204 : vector<1x4x4xf32> to vector<4x4xf32>
    %cst_138 = arith.constant dense<0.000000e+00> : vector<4x256xf32>
    %206 = tpu.matmul %205, %203, %cst_138 {dimension_numbers = #tpu.dot_dimension_numbers<[1], [0], [0], [1], [0, 0, 1, 1], [], []>} : vector<4x4xf32>, vector<4x256xf32>, vector<4x256xf32> -> vector<4x256xf32>
    %207 = arith.addf %200, %206 : vector<4x256xf32>
    %c30_i32 = arith.constant 30 : i32
    %208 = tpu.dynamic_rotate %193 by %c30_i32 dim 1 : vector<4x256xf32>, i32 -> vector<4x256xf32>
    %209 = arith.andi %13, %19 : vector<4x256xi1>
    %cst_139 = arith.constant 0.000000e+00 : f32
    %210 = vector.broadcast %cst_139 : f32 to vector<4x256xf32>
    %211 = arith.select %209, %208, %210 : vector<4x256xi1>, vector<4x256xf32>
    %c2_140 = arith.constant 2 : index
    %c0_141 = arith.constant 0 : index
    %c0_142 = arith.constant 0 : index
    %212 = vector.load %arg23[%c2_140, %c0_141, %c0_142] : memref<9x4x4xf32, #tpu.memory_space<vmem>>, vector<1x4x4xf32>
    %213 = vector.shape_cast %212 : vector<1x4x4xf32> to vector<4x4xf32>
    %cst_143 = arith.constant dense<0.000000e+00> : vector<4x256xf32>
    %214 = tpu.matmul %213, %211, %cst_143 {dimension_numbers = #tpu.dot_dimension_numbers<[1], [0], [0], [1], [0, 0, 1, 1], [], []>} : vector<4x4xf32>, vector<4x256xf32>, vector<4x256xf32> -> vector<4x256xf32>
    %215 = arith.addf %207, %214 : vector<4x256xf32>
    %c2_i32_144 = arith.constant 2 : i32
    %216 = tpu.dynamic_rotate %193 by %c2_i32_144 dim 1 : vector<4x256xf32>, i32 -> vector<4x256xf32>
    %cst_145 = arith.constant 0.000000e+00 : f32
    %217 = vector.broadcast %cst_145 : f32 to vector<4x256xf32>
    %218 = arith.select %17, %216, %217 : vector<4x256xi1>, vector<4x256xf32>
    %c3_146 = arith.constant 3 : index
    %c0_147 = arith.constant 0 : index
    %c0_148 = arith.constant 0 : index
    %219 = vector.load %arg23[%c3_146, %c0_147, %c0_148] : memref<9x4x4xf32, #tpu.memory_space<vmem>>, vector<1x4x4xf32>
    %220 = vector.shape_cast %219 : vector<1x4x4xf32> to vector<4x4xf32>
    %cst_149 = arith.constant dense<0.000000e+00> : vector<4x256xf32>
    %221 = tpu.matmul %220, %218, %cst_149 {dimension_numbers = #tpu.dot_dimension_numbers<[1], [0], [0], [1], [0, 0, 1, 1], [], []>} : vector<4x4xf32>, vector<4x256xf32>, vector<4x256xf32> -> vector<4x256xf32>
    %222 = arith.addf %215, %221 : vector<4x256xf32>
    %c4_150 = arith.constant 4 : index
    %c0_151 = arith.constant 0 : index
    %c0_152 = arith.constant 0 : index
    %223 = vector.load %arg23[%c4_150, %c0_151, %c0_152] : memref<9x4x4xf32, #tpu.memory_space<vmem>>, vector<1x4x4xf32>
    %224 = vector.shape_cast %223 : vector<1x4x4xf32> to vector<4x4xf32>
    %cst_153 = arith.constant dense<0.000000e+00> : vector<4x256xf32>
    %225 = tpu.matmul %224, %193, %cst_153 {dimension_numbers = #tpu.dot_dimension_numbers<[1], [0], [0], [1], [0, 0, 1, 1], [], []>} : vector<4x4xf32>, vector<4x256xf32>, vector<4x256xf32> -> vector<4x256xf32>
    %226 = arith.addf %222, %225 : vector<4x256xf32>
    %c254_i32 = arith.constant 254 : i32
    %227 = tpu.dynamic_rotate %193 by %c254_i32 dim 1 : vector<4x256xf32>, i32 -> vector<4x256xf32>
    %cst_154 = arith.constant 0.000000e+00 : f32
    %228 = vector.broadcast %cst_154 : f32 to vector<4x256xf32>
    %229 = arith.select %19, %227, %228 : vector<4x256xi1>, vector<4x256xf32>
    %c5_155 = arith.constant 5 : index
    %c0_156 = arith.constant 0 : index
    %c0_157 = arith.constant 0 : index
    %230 = vector.load %arg23[%c5_155, %c0_156, %c0_157] : memref<9x4x4xf32, #tpu.memory_space<vmem>>, vector<1x4x4xf32>
    %231 = vector.shape_cast %230 : vector<1x4x4xf32> to vector<4x4xf32>
    %cst_158 = arith.constant dense<0.000000e+00> : vector<4x256xf32>
    %232 = tpu.matmul %231, %229, %cst_158 {dimension_numbers = #tpu.dot_dimension_numbers<[1], [0], [0], [1], [0, 0, 1, 1], [], []>} : vector<4x4xf32>, vector<4x256xf32>, vector<4x256xf32> -> vector<4x256xf32>
    %233 = arith.addf %226, %232 : vector<4x256xf32>
    %c226_i32 = arith.constant 226 : i32
    %234 = tpu.dynamic_rotate %193 by %c226_i32 dim 1 : vector<4x256xf32>, i32 -> vector<4x256xf32>
    %235 = arith.andi %15, %17 : vector<4x256xi1>
    %cst_159 = arith.constant 0.000000e+00 : f32
    %236 = vector.broadcast %cst_159 : f32 to vector<4x256xf32>
    %237 = arith.select %235, %234, %236 : vector<4x256xi1>, vector<4x256xf32>
    %c6_160 = arith.constant 6 : index
    %c0_161 = arith.constant 0 : index
    %c0_162 = arith.constant 0 : index
    %238 = vector.load %arg23[%c6_160, %c0_161, %c0_162] : memref<9x4x4xf32, #tpu.memory_space<vmem>>, vector<1x4x4xf32>
    %239 = vector.shape_cast %238 : vector<1x4x4xf32> to vector<4x4xf32>
    %cst_163 = arith.constant dense<0.000000e+00> : vector<4x256xf32>
    %240 = tpu.matmul %239, %237, %cst_163 {dimension_numbers = #tpu.dot_dimension_numbers<[1], [0], [0], [1], [0, 0, 1, 1], [], []>} : vector<4x4xf32>, vector<4x256xf32>, vector<4x256xf32> -> vector<4x256xf32>
    %241 = arith.addf %233, %240 : vector<4x256xf32>
    %c224_i32_164 = arith.constant 224 : i32
    %242 = tpu.dynamic_rotate %193 by %c224_i32_164 dim 1 : vector<4x256xf32>, i32 -> vector<4x256xf32>
    %cst_165 = arith.constant 0.000000e+00 : f32
    %243 = vector.broadcast %cst_165 : f32 to vector<4x256xf32>
    %244 = arith.select %15, %242, %243 : vector<4x256xi1>, vector<4x256xf32>
    %c7_166 = arith.constant 7 : index
    %c0_167 = arith.constant 0 : index
    %c0_168 = arith.constant 0 : index
    %245 = vector.load %arg23[%c7_166, %c0_167, %c0_168] : memref<9x4x4xf32, #tpu.memory_space<vmem>>, vector<1x4x4xf32>
    %246 = vector.shape_cast %245 : vector<1x4x4xf32> to vector<4x4xf32>
    %cst_169 = arith.constant dense<0.000000e+00> : vector<4x256xf32>
    %247 = tpu.matmul %246, %244, %cst_169 {dimension_numbers = #tpu.dot_dimension_numbers<[1], [0], [0], [1], [0, 0, 1, 1], [], []>} : vector<4x4xf32>, vector<4x256xf32>, vector<4x256xf32> -> vector<4x256xf32>
    %248 = arith.addf %241, %247 : vector<4x256xf32>
    %c222_i32 = arith.constant 222 : i32
    %249 = tpu.dynamic_rotate %193 by %c222_i32 dim 1 : vector<4x256xf32>, i32 -> vector<4x256xf32>
    %250 = arith.andi %15, %19 : vector<4x256xi1>
    %cst_170 = arith.constant 0.000000e+00 : f32
    %251 = vector.broadcast %cst_170 : f32 to vector<4x256xf32>
    %252 = arith.select %250, %249, %251 : vector<4x256xi1>, vector<4x256xf32>
    %c8_171 = arith.constant 8 : index
    %c0_172 = arith.constant 0 : index
    %c0_173 = arith.constant 0 : index
    %253 = vector.load %arg23[%c8_171, %c0_172, %c0_173] : memref<9x4x4xf32, #tpu.memory_space<vmem>>, vector<1x4x4xf32>
    %254 = vector.shape_cast %253 : vector<1x4x4xf32> to vector<4x4xf32>
    %cst_174 = arith.constant dense<0.000000e+00> : vector<4x256xf32>
    %255 = tpu.matmul %254, %252, %cst_174 {dimension_numbers = #tpu.dot_dimension_numbers<[1], [0], [0], [1], [0, 0, 1, 1], [], []>} : vector<4x4xf32>, vector<4x256xf32>, vector<4x256xf32> -> vector<4x256xf32>
    %256 = arith.addf %248, %255 : vector<4x256xf32>
    %c0_175 = arith.constant 0 : index
    %c0_176 = arith.constant 0 : index
    %257 = vector.load %arg24[%c0_175, %c0_176] : memref<4x1xf32, #tpu.memory_space<vmem>>, vector<4x1xf32>
    %258 = vector.broadcast %257 : vector<4x1xf32> to vector<4x256xf32>
    %259 = arith.addf %256, %258 : vector<4x256xf32>
    %260 = arith.addf %259, %51 : vector<4x256xf32>
    %c0_177 = arith.constant 0 : index
    %c0_178 = arith.constant 0 : index
    %c0_179 = arith.constant 0 : index
    %261 = vector.load %arg25[%c0_177, %c0_178, %c0_179] : memref<1x4x256xf32, #tpu.memory_space<vmem>>, vector<1x4x256xf32>
    %262 = vector.shape_cast %261 : vector<1x4x256xf32> to vector<4x256xf32>
    %263 = vector.shape_cast %155 : vector<4x256xf32> to vector<1x4x256xf32>
    tpu.vector_store %arg25[%c0_177, %c0_178, %c0_179], %263 {strides = array<i32>} : memref<1x4x256xf32, #tpu.memory_space<vmem>>, vector<1x4x256xf32>,
    %c0_180 = arith.constant 0 : index
    %c0_181 = arith.constant 0 : index
    %c0_182 = arith.constant 0 : index
    %264 = vector.load %arg26[%c0_180, %c0_181, %c0_182] : memref<1x4x256xf32, #tpu.memory_space<vmem>>, vector<1x4x256xf32>
    %265 = vector.shape_cast %264 : vector<1x4x256xf32> to vector<4x256xf32>
    %266 = vector.shape_cast %260 : vector<4x256xf32> to vector<1x4x256xf32>
    tpu.vector_store %arg26[%c0_180, %c0_181, %c0_182], %266 {strides = array<i32>} : memref<1x4x256xf32, #tpu.memory_space<vmem>>, vector<1x4x256xf32>,
    return
  }
  func.func @transform_0(%arg0: i32) -> (i32, i32, i32) {
    %c0_i32 = arith.constant 0 : i32
    %c0_i32_0 = arith.constant 0 : i32
    %c0_i32_1 = arith.constant 0 : i32
    return %arg0, %c0_i32, %c0_i32_0 : i32, i32, i32
  }
  func.func @transform_1(%arg0: i32) -> (i32, i32, i32) {
    %c0_i32 = arith.constant 0 : i32
    %c0_i32_0 = arith.constant 0 : i32
    %c0_i32_1 = arith.constant 0 : i32
    return %arg0, %c0_i32, %c0_i32_0 : i32, i32, i32
  }
  func.func @transform_2(%arg0: i32) -> (i32, i32) {
    %c0_i32 = arith.constant 0 : i32
    %c0_i32_0 = arith.constant 0 : i32
    %c0_i32_1 = arith.constant 0 : i32
    return %c0_i32, %c0_i32_0 : i32, i32
  }
  func.func @transform_3(%arg0: i32) -> (i32, i32, i32) {
    %c0_i32 = arith.constant 0 : i32
    %c0_i32_0 = arith.constant 0 : i32
    %c0_i32_1 = arith.constant 0 : i32
    %c0_i32_2 = arith.constant 0 : i32
    return %c0_i32, %c0_i32_0, %c0_i32_1 : i32, i32, i32
  }
  func.func @transform_4(%arg0: i32) -> (i32, i32, i32) {
    %c0_i32 = arith.constant 0 : i32
    %c0_i32_0 = arith.constant 0 : i32
    %c0_i32_1 = arith.constant 0 : i32
    %c0_i32_2 = arith.constant 0 : i32
    return %c0_i32, %c0_i32_0, %c0_i32_1 : i32, i32, i32
  }
  func.func @transform_5(%arg0: i32) -> (i32, i32, i32) {
    %c0_i32 = arith.constant 0 : i32
    %c0_i32_0 = arith.constant 0 : i32
    %c0_i32_1 = arith.constant 0 : i32
    %c0_i32_2 = arith.constant 0 : i32
    return %c0_i32, %c0_i32_0, %c0_i32_1 : i32, i32, i32
  }
  func.func @transform_6(%arg0: i32) -> (i32, i32, i32) {
    %c0_i32 = arith.constant 0 : i32
    %c0_i32_0 = arith.constant 0 : i32
    %c0_i32_1 = arith.constant 0 : i32
    %c0_i32_2 = arith.constant 0 : i32
    return %c0_i32, %c0_i32_0, %c0_i32_1 : i32, i32, i32
  }
  func.func @transform_7(%arg0: i32) -> (i32, i32, i32) {
    %c0_i32 = arith.constant 0 : i32
    %c0_i32_0 = arith.constant 0 : i32
    %c0_i32_1 = arith.constant 0 : i32
    %c0_i32_2 = arith.constant 0 : i32
    return %c0_i32, %c0_i32_0, %c0_i32_1 : i32, i32, i32
  }
  func.func @transform_8(%arg0: i32) -> (i32, i32, i32) {
    %c0_i32 = arith.constant 0 : i32
    %c0_i32_0 = arith.constant 0 : i32
    %c0_i32_1 = arith.constant 0 : i32
    %c0_i32_2 = arith.constant 0 : i32
    return %c0_i32, %c0_i32_0, %c0_i32_1 : i32, i32, i32
  }
  func.func @transform_9(%arg0: i32) -> (i32, i32, i32) {
    %c0_i32 = arith.constant 0 : i32
    %c0_i32_0 = arith.constant 0 : i32
    %c0_i32_1 = arith.constant 0 : i32
    %c0_i32_2 = arith.constant 0 : i32
    return %c0_i32, %c0_i32_0, %c0_i32_1 : i32, i32, i32
  }
  func.func @transform_10(%arg0: i32) -> (i32, i32, i32) {
    %c0_i32 = arith.constant 0 : i32
    %c0_i32_0 = arith.constant 0 : i32
    %c0_i32_1 = arith.constant 0 : i32
    %c0_i32_2 = arith.constant 0 : i32
    return %c0_i32, %c0_i32_0, %c0_i32_1 : i32, i32, i32
  }
  func.func @transform_11(%arg0: i32) -> (i32, i32) {
    %c0_i32 = arith.constant 0 : i32
    %c0_i32_0 = arith.constant 0 : i32
    %c0_i32_1 = arith.constant 0 : i32
    return %c0_i32, %c0_i32_0 : i32, i32
  }
  func.func @transform_12(%arg0: i32) -> (i32, i32) {
    %c0_i32 = arith.constant 0 : i32
    %c0_i32_0 = arith.constant 0 : i32
    %c0_i32_1 = arith.constant 0 : i32
    return %c0_i32, %c0_i32_0 : i32, i32
  }
  func.func @transform_13(%arg0: i32) -> (i32, i32) {
    %c0_i32 = arith.constant 0 : i32
    %c0_i32_0 = arith.constant 0 : i32
    %c0_i32_1 = arith.constant 0 : i32
    return %c0_i32, %c0_i32_0 : i32, i32
  }
  func.func @transform_14(%arg0: i32) -> (i32, i32, i32) {
    %c0_i32 = arith.constant 0 : i32
    %c0_i32_0 = arith.constant 0 : i32
    %c0_i32_1 = arith.constant 0 : i32
    %c0_i32_2 = arith.constant 0 : i32
    return %c0_i32, %c0_i32_0, %c0_i32_1 : i32, i32, i32
  }
  func.func @transform_15(%arg0: i32) -> (i32, i32) {
    %c0_i32 = arith.constant 0 : i32
    %c0_i32_0 = arith.constant 0 : i32
    %c0_i32_1 = arith.constant 0 : i32
    return %c0_i32, %c0_i32_0 : i32, i32
  }
  func.func @transform_16(%arg0: i32) -> (i32, i32) {
    %c0_i32 = arith.constant 0 : i32
    %c0_i32_0 = arith.constant 0 : i32
    %c0_i32_1 = arith.constant 0 : i32
    return %c0_i32, %c0_i32_0 : i32, i32
  }
  func.func @transform_17(%arg0: i32) -> (i32, i32) {
    %c0_i32 = arith.constant 0 : i32
    %c0_i32_0 = arith.constant 0 : i32
    %c0_i32_1 = arith.constant 0 : i32
    return %c0_i32, %c0_i32_0 : i32, i32
  }
  func.func @transform_18(%arg0: i32) -> (i32, i32) {
    %c0_i32 = arith.constant 0 : i32
    %c0_i32_0 = arith.constant 0 : i32
    %c0_i32_1 = arith.constant 0 : i32
    return %c0_i32, %c0_i32_0 : i32, i32
  }
  func.func @transform_19(%arg0: i32) -> (i32, i32) {
    %c0_i32 = arith.constant 0 : i32
    %c0_i32_0 = arith.constant 0 : i32
    %c0_i32_1 = arith.constant 0 : i32
    return %c0_i32, %c0_i32_0 : i32, i32
  }
  func.func @transform_20(%arg0: i32) -> (i32, i32) {
    %c0_i32 = arith.constant 0 : i32
    %c0_i32_0 = arith.constant 0 : i32
    %c0_i32_1 = arith.constant 0 : i32
    return %c0_i32, %c0_i32_0 : i32, i32
  }
  func.func @transform_21(%arg0: i32) -> (i32, i32) {
    %c0_i32 = arith.constant 0 : i32
    %c0_i32_0 = arith.constant 0 : i32
    %c0_i32_1 = arith.constant 0 : i32
    return %c0_i32, %c0_i32_0 : i32, i32
  }
  func.func @transform_22(%arg0: i32) -> (i32, i32, i32) {
    %c0_i32 = arith.constant 0 : i32
    %c0_i32_0 = arith.constant 0 : i32
    %c0_i32_1 = arith.constant 0 : i32
    %c0_i32_2 = arith.constant 0 : i32
    return %c0_i32, %c0_i32_0, %c0_i32_1 : i32, i32, i32
  }
  func.func @transform_23(%arg0: i32) -> (i32, i32) {
    %c0_i32 = arith.constant 0 : i32
    %c0_i32_0 = arith.constant 0 : i32
    %c0_i32_1 = arith.constant 0 : i32
    return %c0_i32, %c0_i32_0 : i32, i32
  }
  func.func @transform_24(%arg0: i32) -> (i32, i32, i32) {
    %c0_i32 = arith.constant 0 : i32
    %c0_i32_0 = arith.constant 0 : i32
    %c0_i32_1 = arith.constant 0 : i32
    return %arg0, %c0_i32, %c0_i32_0 : i32, i32, i32
  }
  func.func @transform_25(%arg0: i32) -> (i32, i32, i32) {
    %c0_i32 = arith.constant 0 : i32
    %c0_i32_0 = arith.constant 0 : i32
    %c0_i32_1 = arith.constant 0 : i32
    return %arg0, %c0_i32, %c0_i32_0 : i32, i32, i32
  }
}

</mosaic_0001>

<bundles_post_ra>
// kernel: tpu_custom_call.1
= control target key start
LH: loop header
LB: loop body
LE: loop exit
PB: predicated region body
PF: predicated region fallthrough
CT: control target
= control target key end

     0   :  { %s3583_s0 = inlined_call_operand.vmem [shape: f32[2,4,256], index: 0, kind: input, shape index: {}]   ;;  %s3584_s1 = inlined_call_operand.vmem [shape: f32[2,4,256], index: 1, kind: input, shape index: {}]   ;;  %s3585_s2 = inlined_call_operand.vmem [shape: s32[1,256], index: 2, kind: input, shape index: {}]   ;;  %s3586_s3 = inlined_call_operand.vmem [shape: f32[2,4,1], index: 3, kind: input, shape index: {}]   ;;  %s3587_s4 = inlined_call_operand.vmem [shape: f32[2,4,1], index: 4, kind: input, shape index: {}]   ;;  %s3588_s5 = inlined_call_operand.vmem [shape: f32[2,4,1], index: 5, kind: input, shape index: {}]   ;;  %s3589_s6 = inlined_call_operand.vmem [shape: f32[2,4,1], index: 6, kind: input, shape index: {}]   ;;  %s3590_s7 = inlined_call_operand.vmem [shape: f32[2,4,1], index: 7, kind: input, shape index: {}]   ;;  %s3591_s8 = inlined_call_operand.vmem [shape: f32[2,4,1], index: 8, kind: input, shape index: {}]   ;;  %s3592_s9 = inlined_call_operand.vmem [shape: f32[2,4,1], index: 9, kind: input, shape index: {}]   ;;  %s3593_s10 = inlined_call_operand.vmem [shape: f32[2,4,1], index: 10, kind: input, shape index: {}]   ;;  %s3594_s11 = inlined_call_operand.vmem [shape: f32[4,4], index: 11, kind: input, shape index: {}]   ;;  %s3595_s12 = inlined_call_operand.vmem [shape: f32[4,4], index: 12, kind: input, shape index: {}]   ;;  %s3596_s13 = inlined_call_operand.vmem [shape: f32[4,1], index: 13, kind: input, shape index: {}]   ;;  %s3597_s14 = inlined_call_operand.vmem [shape: f32[9,4,4], index: 14, kind: input, shape index: {}]   ;;  %s3598_s15 = inlined_call_operand.vmem [shape: f32[4,1], index: 15, kind: input, shape index: {}]   ;;  %s3599_s16 = inlined_call_operand.vmem [shape: f32[4,4], index: 16, kind: input, shape index: {}]   ;;  %s3600_s17 = inlined_call_operand.vmem [shape: f32[4,4], index: 17, kind: input, shape index: {}]   ;;  %s3601_s18 = inlined_call_operand.vmem [shape: f32[4,1], index: 18, kind: input, shape index: {}]   ;;  %s3602_s19 = inlined_call_operand.vmem [shape: f32[4,4], index: 19, kind: input, shape index: {}]   ;;  %s3603_s20 = inlined_call_operand.vmem [shape: f32[4,4], index: 20, kind: input, shape index: {}]   ;;  %s3604_s21 = inlined_call_operand.vmem [shape: f32[4,1], index: 21, kind: input, shape index: {}]   ;;  %s3605_s22 = inlined_call_operand.vmem [shape: f32[9,4,4], index: 22, kind: input, shape index: {}]   ;;  %s3606_s23 = inlined_call_operand.vmem [shape: f32[4,1], index: 23, kind: input, shape index: {}]   ;;  %s3607_s24 = inlined_call_operand.hbm [shape: f32[2,4,256], index: 24, kind: output, shape index: {0}]   ;;  %s3608_s25 = inlined_call_operand.hbm [shape: f32[2,4,256], index: 25, kind: output, shape index: {1}]  }
   0x1   :  { %3629 = sst [smem:[#allocation14_spill]] %s3583_s0 }
   0x2   :  { %3630 = sst [smem:[#allocation15_spill]] %s3584_s1 }
   0x3   :  { %3631 = sst [smem:[#allocation16_spill]] %s3585_s2 }
   0x4   :  { %3632 = sst [smem:[#allocation17_spill]] %s3586_s3 }
   0x5   :  { %3633 = sst [smem:[#allocation18_spill]] %s3587_s4 }
   0x6   :  { %3634 = sst [smem:[#allocation19_spill]] %s3588_s5 }
   0x7   :  { %3635 = sst [smem:[#allocation20_spill]] %s3589_s6 }
   0x8   :  { %3636 = sst [smem:[#allocation21_spill]] %s3590_s7 }
   0x9   :  { %3637 = sst [smem:[#allocation22_spill]] %s3591_s8 }
   0xa   :  { %3638 = sst [smem:[#allocation23_spill]] %s3592_s9 }
   0xb   :  { %3639 = sst [smem:[#allocation24_spill]] %s3593_s10 }
   0xc   :  { %3640 = sst [smem:[#allocation25_spill]] %s3594_s11 }
   0xd   :  { %3641 = sst [smem:[#allocation26_spill]] %s3595_s12 }
   0xe   :  { %3642 = sst [smem:[#allocation27_spill]] %s3596_s13 }
   0xf   :  { %3643 = sst [smem:[#allocation28_spill]] %s3597_s14 }
  0x10   :  { %3644 = sst [smem:[#allocation29_spill]] %s3598_s15 }
  0x11   :  { %3645 = sst [smem:[#allocation30_spill]] %s3607_s24 }
  0x12   :  { %3646 = sst [smem:[#allocation31_spill]] %s3608_s25 }
  0x13   :  { %31 = vsyncpa [#allocation3], 0 }
  0x14   :  { %33 = vsyncpa [#allocation3 + $0x1], 0 }
  0x15   :  { %34 = vsyncpa [#allocation5], 0 }
  0x16   :  { %36 = vsyncpa [#allocation5 + $0x1], 0  ;;  %s3057_s29 = smov 0   ;;  %s3059_s2 = smov 0  }
  0x17   :  { %s3061_s6 = smov 0   ;;  %s3063_s30 = smov 0  }
  0x18 LB: > { %3647 = sst [smem:[#allocation8_spill]] %s2895_s29  ;;  %s3078_s7 = sadd.s32 4294967295, %s2907_s30   ;;  %s2907_s30 = sphi %s3063_s30, %s3684_s30   ;;  %s2903_s6 = sphi %s3061_s6, %s3686_s6   ;;  %s2899_s2 = sphi %s3059_s2, %s3688_s2   ;;  %s2895_s29 = sphi %s3057_s29, %s3687_s29  }
  0x19   : > { %3648 = sst [smem:[#allocation9_spill]] %s2903_s6  ;;  %s2606_s3 = sadd.s32 4294967294, %s2907_s30  }
  0x1a   : > { %3649 = sst [smem:[#allocation10_spill]] %s2907_s30  ;;  %s3082_s26 = sadd.s32 1, %s2907_s30  }
  0x1b   : > { %3650 = sst [smem:[#allocation11_spill]] %s3082_s26  ;;  %s563_s1 = sadd.s32 1, %s2903_s6 }
  0x1c   : > { %s560_s8 = ssub.s32 %s2907_s30, %s3082_s26  ;;  %p573_p0 = scmp.ne.s32.totalorder %s2903_s6, %s2899_s2 }
  0x1d   : > { %p561_p1 = scmp.eq.s32.totalorder %s560_s8, 0  ;;  %p574_p2 = scmp.eq.s32.totalorder %s3078_s7, 1 }
  0x1e   : > { %p579_p3 = scmp.ne.s32.totalorder %s2899_s2, %s2895_s29  ;;  %p580_p4 = scmp.eq.s32.totalorder %s2606_s3, 1 }
  0x1f   : > { %s3093_s27 = scalar_select %p561_p1, %s2903_s6, %s563_s1  }
  0x20   : > { %p3095_p5 = por %p574_p2, %p573_p0  ;;  %p3099_p6 = por %p580_p4, %p579_p3 }
  0x21   : > { %3651 = sst [smem:[#allocation12_spill]] %s3093_s27  ;;  %p2609_p7 = scmp.ge.s32.totalorder %s2907_s30, 1 }
  0x22   : > { %s3653_s28 = scalar_select %p3099_p6, 1, 0 }
  0x23   : > { %p706_p8 = scmp.lt.s32.totalorder %s2907_s30, 3 }
  0x24   : > { %3654 = sst [smem:[#allocation13_spill]] %s3653_s28 }
  0x25   : > { %p707_p9 = pnand %p2609_p7, %p706_p8 }
  0x26   : > { %s3655_s0 = sld [smem:[#allocation21_spill]] (!%p707_p9)  ;;  %p784_p10 = scmp.lt.s32.totalorder (!%p707_p9), %s3078_s7, 1 }
  0x27   : > { %710 = sbr.rel (%p707_p9) target bundleno = 1082 (0x43a), region = 116  ;;  %s3656_s1 = sld [smem:[#allocation20_spill]] (!%p707_p9) }
  0x28   : > { %s3657_s26 = sld [smem:[#allocation18_spill]] (!%p707_p9)  ;;  %s2914_s8 = smov (!%p707_p9), 1  }
  0x29   : > { %s3658_s30 = sld [smem:[#allocation17_spill]] (!%p707_p9)  ;;  %s2917_s6 = smov (!%p707_p9), 112  }
  0x2a   : > { %s3660_s13 = sld [smem:[#allocation27_spill]] (!%p707_p9)  ;;  %s2918_s27 = smov (!%p707_p9), 111  }
  0x2b   : > { %s3661_s3 = sld [smem:[#allocation19_spill]] (!%p707_p9) }
  0x2c   : > { %v842_v0 = vld [vmem:[%s3655_s0] sm:$0xf]  ;;  %v2909_v2 = vmov 0   ;;  %v2617_v4 = vld [vmem:[%s3655_s0 + $0x4] sm:$0xf]  ;;  %s785_s24 = scalar_select %p784_p10, %s3078_s7, 1 }
  0x2d   : > { %v818_v1 = vld [vmem:[%s3656_s1] sm:$0xf]  ;;  %2811 = vset.pattern.permute.xlu1 %v2909_v2  ;;  %2810 = vset.pattern.permute.xlu0 %v2909_v2  ;;  %v2616_v5 = vld [vmem:[%s3656_s1 + $0x4] sm:$0xf]  ;;  %v2910_v12 = vmov 839922192  }
  0x2e   : > { %845 = vperm.xlu0 %2810, %v842_v0   ;;  %821 = vperm.xlu1 %2811, %v818_v1   ;;  %v1004_v3 = vld [vmem:[%s3657_s26] sm:$0xf]  ;;  %v2627_v6 = vld [vmem:[%s3657_s26 + $0x4] sm:$0xf]  ;;  %v824_v13 = vunpack.c.l.s4 %v2910_v12  ;;  %s3662_s29 = sld [smem:[#allocation15_spill]]  ;;  %vm876_vm0 = vcmask 1043456  }
  0x2f   : > { %2812 = vset.pattern.permute.xlu2 %v2909_v2  ;;  %s3659_s25 = smov %s3658_s30  ;;  %v980_v7 = vld [vmem:[%s3658_s30] sm:$0xf]  ;;  %s2744_s30 = sshll.u32 %s785_s24, 3  ;;  %vm872_vm1 = vcmask 31744  }
  0x30   : > { %1007 = vperm.xlu2 %2812, %v1004_v3   ;;  %v2626_v8 = vld [vmem:[%s3659_s25 + $0x4] sm:$0xf]  ;;  %v1132_v9 = vld [vmem:[%s3660_s13] sm:$0xf]  ;;  %v3140_v16 = vunpack.c.0.s8 %v824_v13  ;;  %s3663_s9 = sld [smem:[#allocation14_spill]]  ;;  %s2911_s1 = smov 17  }
  0x31   : > { %v1140_v10 = vld [vmem:[%s3661_s3] sm:$0xf]  ;;  %v2636_v11 = vld [vmem:[%s3661_s3 + $0x4] sm:$0xf]  ;;  %s3664_s12 = sld [smem:[#allocation26_spill]]  ;;  %s2915_s24 = smov 127  }
  0x32   : > { %v867_v36 = vld [vmem:[%s3600_s17] sm:$0xf]  ;;  %s3665_s11 = sld [smem:[#allocation25_spill]]  ;;  %s3380_s3 = sand.u32 1, %s2899_s2  }
  0x33   : > { %v866_v45 = vld [vmem:[%s3599_s16] sm:$0xf]  ;;  %s3666_s0 = sld [smem:[#allocation22_spill]] }
  0x34   : > { %s793_s28 = scalar_lea.vmem %s3662_s29, %s2744_s30  ;;  %s3667_s15 = sld [smem:[#allocation29_spill]] }
  0x35   : > { %v3146_v18 = vld [vmem:[%s793_s28] sm:$0xff]  ;;  %s3669_s10 = sld [smem:[#allocation24_spill]]  ;;  %s2919_s28 = smov 30  }
  0x36   : > { %857 = vperm.xlu0 %2810, %v2617_v4   ;;  %833 = vperm.xlu1 %2811, %v2616_v5   ;;  %s788_s5 = scalar_lea.vmem %s3663_s9, %s2744_s30  ;;  %s2912_s9 = smov 16  }
  0x37   : > { %v816_v24 = vld [vmem:[%s788_s5] sm:$0xff]  ;;  %s2913_s5 = smov 15   ;;  %s2916_s30 = smov 113  }
  0x38   : > { %1019 = vperm.xlu2 %2812, %v2627_v6   ;;  %v1029_v51 = vld [vmem:[%s3664_s12] sm:$0xf]  ;;  %s3671_s14 = sld [smem:[#allocation28_spill]] }
  0x39   : > { %v1028_v54 = vld [vmem:[%s3665_s11] sm:$0xf]  ;;  %s2924_s11 = smov 126  }
  0x3e   : > { %983 = vperm.xlu0 %2810, %v980_v7   ;;  %995 = vperm.xlu1 %2811, %v2626_v8  }
  0x40   : > { %1135 = vperm.xlu2 %2812, %v1132_v9  }
  0x46   : > { %1143 = vperm.xlu0 %2810, %v1140_v10   ;;  %1152 = vperm.xlu1 %2811, %v2636_v11  }
  0x8a   : > { %v1008_v23 = vpop.permute.xlu2 %1007 }
  0x8b   : > { %v1012_v30 = vperm.slane %v1008_v23, %v3140_v16  ;;  %v1872_v23 = vld [vmem:[%s3669_s10] sm:$0xf] }
  0x8d   : > { %v1014_v33 = vmul.f32 %v1012_v30, %v3146_v18 }
  0x92   : > { %v1020_v32 = vpop.permute.xlu2 %1019 }
  0x93   : > { %v1024_v34 = vperm.slane %v1020_v32, %v3140_v16 }
  0x95   : > { %v1026_v40 = vadd.f32 %v1024_v34, %v1014_v33 }
  0x97   : > { %v1027_v43 = vmax.f32 %v1026_v40, 0.0  ;;  %v2637_v40 = vld [vmem:[%s3671_s14 + $0x4] sm:$0xf] }
  0x9a   : > { %v1136_v5 = vpop.permute.xlu2 %1135 }
  0xa0   : > { %v846_v14 = vpop.permute.xlu0 %845  ;;  %v822_v15 = vpop.permute.xlu1 %821 }
  0xa1   : > { %v850_v17 = vperm.slane %v846_v14, %v3140_v16  ;;  %v826_v21 = vperm.slane %v822_v15, %v3140_v16 }
  0xa3   : > { %v852_v20 = vmul.f32 %v850_v17, %v3146_v18  ;;  %v828_v27 = vmul.f32 %v826_v21, %v816_v24  ;;  %v1719_v17 = vld [vmem:[%s3666_s0] sm:$0xf] }
  0xa8   : > { %v858_v19 = vpop.permute.xlu0 %857  ;;  %v834_v25 = vpop.permute.xlu1 %833 }
  0xa9   : > { %v862_v22 = vperm.slane %v858_v19, %v3140_v16  ;;  %v838_v29 = vperm.slane %v834_v25, %v3140_v16  ;;  %v1711_v19 = vld [vmem:[%s3667_s15] sm:$0xf] }
  0xaa   : > { %v1864_v25 = vld [vmem:[%s3604_s21] sm:$0xf] }
  0xab   : > { %v864_v26 = vadd.f32 %v862_v22, %v852_v20  ;;  %v840_v31 = vadd.f32 %v838_v29, %v828_v27  ;;  %v2681_v22 = vld [vmem:[%s3666_s0 + $0x4] sm:$0xf]  ;;  %v794_v27 = vlaneseq }
  0xad   : > { %v865_v28 = vmax.f32 %v864_v26, 0.0  ;;  %v841_v35 = vmax.f32 %v840_v31, 0.0  ;;  %v3239_v30 = vand.u32 127, %v794_v27  ;;  %v2676_v27 = vld [vmem:[%s3671_s14 + $0x20] sm:$0xf] }
  0xaf   : > { %869 = vst [vmem:[#allocation1] ss:$2 sm:$0xff] %v865_v28  ;;  %vm800_vm2 = vcmp.ge.s32.totalorder %v3239_v30, 16  ;;  %vm1163_vm4 = vcmp.lt.s32.totalorder %v3239_v30, 17  ;;  %vm1175_vm5 = vcmp.lt.s32.totalorder %v3239_v30, 16  ;;  %vm1284_vm9 = vcmp.lt.s32.totalorder %v3239_v30, 15 }
  0xb0   : > { %v984_v37 = vpop.permute.xlu0 %983  ;;  %v996_v42 = vpop.permute.xlu1 %995  ;;  %vm1348_vm12 = vcmp.lt.s32.totalorder %v3239_v30, 1  ;;  %vm1463_vm13 = vcmp.lt.s32.totalorder %v3239_v30, 127  ;;  %vm1525_vm15 = vcmp.lt.s32.totalorder %v3239_v30, 113 }
  0xb1   : > { %v988_v41 = vperm.slane %v984_v37, %v3140_v16  ;;  %v1000_v48 = vperm.slane %v996_v42, %v3140_v16 }
  0xb3   : > { %v990_v44 = vmul.f32 %v988_v41, %v816_v24  ;;  %v2691_v24 = vld [vmem:[%s3669_s10 + $0x4] sm:$0xf] }
  0xb5   : > { %v1002_v49 = vadd.f32 %v1000_v48, %v990_v44  ;;  %v1170_v44 = vld [vmem:[%s3671_s14] sm:$0xf] }
  0xb6   : > { %v870_v38 = vld.sshfl [vmem:[#allocation1] sm:$0xff pattern:$0x75316420]  ;;  %v871_v39 = vld.sshfl [vmem:[#allocation1 + $0x8] sm:$0xff pattern:$0x75316420] }
  0xb7   : > { %2618 = vmatpush.msk.msra.mxu0 %vm876_vm0, %v870_v38  ;;  %2620 = vmatpush.msk.msra.mxu1 %vm876_vm0, %v871_v39  ;;  %922 = vst [vmem:[#allocation1] ss:$2 sm:$0xff] %v841_v35  ;;  %v1003_v50 = vmax.f32 %v1002_v49, 0.0 }
  0xb8   : > { %2619 = vmatmul.msk.f32.vlgmr.msra.gmra.mxu0 %vm872_vm1, %v867_v36  ;;  %2621 = vmatmul.msk.f32.vlgmr.msra.gmra.mxu1 %vm872_vm1, %v867_v36  ;;  %v1144_v8 = vpop.permute.xlu0 %1143  ;;  %v1153_v11 = vpop.permute.xlu1 %1152 }
  0xbe   : > { %v923_v46 = vld.sshfl [vmem:[#allocation1] sm:$0xff pattern:$0x75316420]  ;;  %v924_v47 = vld.sshfl [vmem:[#allocation1 + $0x8] sm:$0xff pattern:$0x75316420] }
  0xbf   : > { %2622 = vmatpush.msk.msra.mxu2 %vm876_vm0, %v923_v46  ;;  %2624 = vmatpush.msk.msra.mxu3 %vm876_vm0, %v924_v47  ;;  %1031 = vst [vmem:[#allocation1] ss:$2 sm:$0xff] %v1027_v43 }
  0xc0   : > { %2623 = vmatmul.msk.f32.vlgmr.msra.gmra.mxu2 %vm872_vm1, %v866_v45  ;;  %2625 = vmatmul.msk.f32.vlgmr.msra.gmra.mxu3 %vm872_vm1, %v866_v45 }
  0xc6   : > { %v1032_v52 = vld.sshfl [vmem:[#allocation1] sm:$0xff pattern:$0x75316420]  ;;  %v1033_v53 = vld.sshfl [vmem:[#allocation1 + $0x8] sm:$0xff pattern:$0x75316420] }
  0xc7   : > { %2628 = vmatpush.msk.msrb.mxu0 %vm876_vm0, %v1032_v52  ;;  %2630 = vmatpush.msk.msrb.mxu1 %vm876_vm0, %v1033_v53  ;;  %1082 = vst [vmem:[#allocation1] ss:$2 sm:$0xff] %v1003_v50  ;;  %v2646_v52 = vld [vmem:[%s3671_s14 + $0x8] sm:$0xf] }
  0xc8   : > { %2629 = vmatmul.msk.f32.vlgmr.msrb.gmra.mxu0 %vm872_vm1, %v1029_v51  ;;  %2631 = vmatmul.msk.f32.vlgmr.msrb.gmra.mxu1 %vm872_vm1, %v1029_v51 }
  0xce   : > { %v1083_v55 = vld.sshfl [vmem:[#allocation1] sm:$0xff pattern:$0x75316420]  ;;  %v1084_v56 = vld.sshfl [vmem:[#allocation1 + $0x8] sm:$0xff pattern:$0x75316420] }
  0xcf   : > { %2632 = vmatpush.msk.msrb.mxu2 %vm876_vm0, %v1083_v55  ;;  %2634 = vmatpush.msk.msrb.mxu3 %vm876_vm0, %v1084_v56  ;;  %v3295_v55 = vadd.s32 128, %v3239_v30 }
  0xd0   : > { %2633 = vmatmul.msk.f32.vlgmr.msrb.gmra.mxu2 %vm872_vm1, %v1028_v54  ;;  %2635 = vmatmul.msk.f32.vlgmr.msrb.gmra.mxu3 %vm872_vm1, %v1028_v54 }
  0xd1   : > { %vm803_vm14 = vcmp.lt.s32.totalorder %v3295_v55, 240 }
 0x135   : > { %v918_v57 = vpop.f32.mrf.mxu1  ;;  %v898_v58 = vpop.f32.mrf.mxu0 }
 0x143   : > { %v949_v59 = vpop.f32.mrf.mxu2  ;;  %v969_v60 = vpop.f32.mrf.mxu3 }
 0x144   : > { %v3188_v61 = vadd.f32 %v949_v59, %v898_v58  ;;  %v3190_v62 = vadd.f32 %v969_v60, %v918_v57  ;;  %v2651_v60 = vld [vmem:[%s3671_s14 + $0xc] sm:$0xf] }
 0x145   : > { %v1058_v63 = vpop.f32.mrf.mxu0  ;;  %v1078_v0 = vpop.f32.mrf.mxu1 }
 0x153   : > { %v1109_v1 = vpop.f32.mrf.mxu2  ;;  %v1129_v2 = vpop.f32.mrf.mxu3 }
 0x154   : > { %v1110_v3 = vadd.f32 %v1109_v1, %v1058_v63  ;;  %v1130_v4 = vadd.f32 %v1129_v2, %v1078_v0 }
 0x156   : > { %v1138_v6 = vadd.f32 %v1136_v5, %v1110_v3  ;;  %v1139_v7 = vadd.f32 %v1136_v5, %v1130_v4  ;;  %v2656_v3 = vld [vmem:[%s3671_s14 + $0x10] sm:$0xf] }
 0x158   : > { %v1146_v9 = vmul.f32 %v1144_v8, %v1138_v6  ;;  %v1147_v10 = vmul.f32 %v1144_v8, %v1139_v7 }
 0x15a   : > { %v1155_v12 = vadd.f32 %v1153_v11, %v1146_v9  ;;  %v1156_v13 = vadd.f32 %v1153_v11, %v1147_v10  ;;  %v2661_v9 = vld [vmem:[%s3671_s14 + $0x14] sm:$0xf] }
 0x15c   : > { %v3192_v14 = vmax.f32 %v1155_v12, 0.0  ;;  %v3194_v15 = vmax.f32 %v1156_v13, 0.0  ;;  %v2666_v12 = vld [vmem:[%s3671_s14 + $0x18] sm:$0xf] }
 0x15e   : > { %1161 = vrot.lane.b32.xlu0 %v3194_v15, %s2911_s1  ;;  %1171 = vrot.lane.b32.xlu1 %v3192_v14, %s2912_s9 }
 0x15f   : > { %1159 = vrot.lane.b32.xlu2 %v3192_v14, %s2911_s1  ;;  %s2921_s1 = smov 34  }
 0x166   : > { %1280 = vrot.lane.b32.xlu0 %v3192_v14, %s2913_s5  ;;  %1282 = vrot.lane.b32.xlu1 %v3194_v15, %s2913_s5  ;;  %s2923_s5 = smov 2  }
 0x167   : > { %1173 = vrot.lane.b32.xlu2 %v3194_v15, %s2912_s9  ;;  %s2922_s9 = smov 98  }
 0x16e   : > { %1346 = vrot.lane.b32.xlu0 %v3194_v15, %s2914_s8  ;;  %1459 = vrot.lane.b32.xlu1 %v3192_v14, %s2915_s24 }
 0x16f   : > { %1344 = vrot.lane.b32.xlu2 %v3192_v14, %s2914_s8  ;;  %s3670_s8 = sld [smem:[#allocation16_spill]] }
 0x175   : > { %v797_v29 = vld [vmem:[%s3670_s8] sm:$0x3]  ;;  %s3627_s8 = sshll.u32 %s3380_s3, 3 }
 0x176   : > { %1521 = vrot.lane.b32.xlu0 %v3192_v14, %s2916_s30  ;;  %1523 = vrot.lane.b32.xlu1 %v3194_v15, %s2916_s30  ;;  %v3241_v31 = vperm.slane %v797_v29, 0  ;;  %v3243_v32 = vperm.slane %v797_v29, 1  ;;  %s3389_s29 = scalar_lea.vmem [#allocation2], %s3627_s8  ;;  %s2925_s30 = smov 96  }
 0x177   : > { %1461 = vrot.lane.b32.xlu2 %v3194_v15, %s2915_s24  ;;  %s3668_s24 = sld [smem:[#allocation23_spill]]  ;;  %s2746_s8 = sshll.u32 %s3078_s7, 3 }
 0x178   : > { %vm804_vm3 = vcmp.ge.s32.totalorder %v3241_v31, 1  ;;  %vm805_vm6 = vcmp.ge.s32.totalorder %v3243_v32, 1  ;;  %vm806_vm8 = vcmp.lt.s32.totalorder %v3241_v31, 15  ;;  %vm807_vm10 = vcmp.lt.s32.totalorder %v3243_v32, 15 }
 0x179   : > { %vm1166_vm7 = vmand %vm800_vm2, %vm804_vm3 }
 0x17a   : > { %vm1287_vm11 = vmand %vm800_vm2, %vm806_vm8 }
 0x17d   : > { %v1743_v20 = vld [vmem:[%s3668_s24] sm:$0xf]  ;;  %v2682_v21 = vld [vmem:[%s3668_s24 + $0x4] sm:$0xf] }
 0x17e   : > { %1587 = vrot.lane.b32.xlu0 %v3194_v15, %s2917_s6  ;;  %1647 = vrot.lane.b32.xlu1 %v3192_v14, %s2918_s27 }
 0x17f   : > { %1585 = vrot.lane.b32.xlu2 %v3192_v14, %s2917_s6  ;;  %s2926_s6 = smov 94  }
 0x186   : > { %1722 = vperm.xlu0 %2810, %v1719_v17   ;;  %1714 = vperm.xlu1 %2811, %v1711_v19  }
 0x187   : > { %1649 = vrot.lane.b32.xlu2 %v3194_v15, %s2918_s27  ;;  %s2920_s27 = smov 32  }
 0x18e   : > { %1746 = vperm.xlu0 %2810, %v1743_v20   ;;  %1755 = vperm.xlu1 %2811, %v2682_v21  }
 0x18f   : > { %1734 = vperm.xlu2 %2812, %v2681_v22  }
 0x196   : > { %1875 = vperm.xlu0 %2810, %v1872_v23   ;;  %1884 = vperm.xlu1 %2811, %v2691_v24   ;;  %v2671_v23 = vld [vmem:[%s3671_s14 + $0x1c] sm:$0xf] }
 0x197   : > { %1867 = vperm.xlu2 %2812, %v1864_v25  }
 0x1b9   : > { %v1160_v26 = vpop.permute.xlu2 %1159 }
 0x1c1   : > { %v1174_v28 = vpop.permute.xlu2 %1173 }
 0x1c9   : > { %v1345_v33 = vpop.permute.xlu2 %1344 }
 0x1d0   : > { %v1162_v34 = vpop.permute.xlu0 %1161  ;;  %v1172_v35 = vpop.permute.xlu1 %1171 }
 0x1d1   : > { %v1164_v36 = vsel %vm1163_vm4, %v1160_v26, %v1162_v34  ;;  %v1165_v37 = vsel %vm1163_vm4, %v1162_v34, %v1160_v26  ;;  %v1176_v38 = vsel %vm1175_vm5, %v1172_v35, %v1174_v28  ;;  %v1177_v39 = vsel %vm1175_vm5, %v1174_v28, %v1172_v35  ;;  %v1462_v49 = vpop.permute.xlu2 %1461 }
 0x1d2   : > { %v1168_v41 = vsel %vm1166_vm7, %v1165_v37, 0.0  ;;  %v1169_v42 = vsel %vm805_vm6, %v1164_v36, 0.0  ;;  %v1178_v43 = vsel %vm800_vm2, %v1177_v39, 0.0  ;;  %2640 = vmatpush.msk.msra.mxu1 %vm876_vm0, %v1176_v38  ;;  %vm1529_vm2 = vmand %vm803_vm14, %vm805_vm6  ;;  %vm1589_vm4 = vcmp.lt.s32.totalorder %v3239_v30, 112 }
 0x1d3   : > { %2638 = vmatpush.msk.msra.mxu0 %vm876_vm0, %v1178_v43  ;;  %2642 = vmatpush.msk.msra.mxu2 %vm876_vm0, %v1168_v41  ;;  %vm1651_vm5 = vcmp.lt.s32.totalorder %v3239_v30, 111  ;;  %vm814_vm7 = vcmp.lt.s32.totalorder %v3241_v31, 14 }
 0x1d4   : > { %2644 = vmatpush.msk.msra.mxu3 %vm876_vm0, %v1169_v42  ;;  %2641 = vmatmul.msk.f32.vlgmr.msra.gmra.mxu1 %vm872_vm1, %v2637_v40 }
 0x1d5   : > { %2645 = vmatmul.msk.f32.vlgmr.msra.gmra.mxu3 %vm872_vm1, %v1170_v44  ;;  %2639 = vmatmul.msk.f32.vlgmr.msra.gmra.mxu0 %vm872_vm1, %v2637_v40 }
 0x1d6   : > { %2643 = vmatmul.msk.f32.vlgmr.msra.gmra.mxu2 %vm872_vm1, %v1170_v44 }
 0x1d8   : > { %v1281_v45 = vpop.permute.xlu0 %1280  ;;  %v1283_v46 = vpop.permute.xlu1 %1282 }
 0x1d9   : > { %v1285_v47 = vsel %vm1284_vm9, %v1281_v45, %v1283_v46  ;;  %v1286_v48 = vsel %vm1284_vm9, %v1283_v46, %v1281_v45  ;;  %v1586_v4 = vpop.permute.xlu2 %1585  ;;  %vm1907_vm9 = vcmp.lt.s32.totalorder %v3239_v30, 32 }
 0x1da   : > { %v1289_v50 = vsel %vm1287_vm11, %v1286_v48, 0.0  ;;  %v1290_v51 = vsel %vm807_vm10, %v1285_v47, 0.0 }
 0x1db   : > { %2647 = vmatpush.msk.msrb.mxu0 %vm876_vm0, %v1289_v50  ;;  %2649 = vmatpush.msk.msrb.mxu1 %vm876_vm0, %v1290_v51 }
 0x1dc   : > { %2650 = vmatmul.msk.f32.vlgmr.msrb.gmra.mxu1 %vm872_vm1, %v2646_v52 }
 0x1dd   : > { %2657 = vmatpush.msk.msra.mxu0 %vm876_vm0, %v3192_v14  ;;  %2659 = vmatpush.msk.msra.mxu1 %vm876_vm0, %v3194_v15 }
 0x1de   : > { %2648 = vmatmul.msk.f32.vlgmr.msrb.gmra.mxu0 %vm872_vm1, %v2646_v52 }
 0x1e0   : > { %v1347_v53 = vpop.permute.xlu0 %1346  ;;  %v1460_v54 = vpop.permute.xlu1 %1459 }
 0x1e1   : > { %v1349_v56 = vsel %vm1348_vm12, %v1345_v33, %v1347_v53  ;;  %v1350_v57 = vsel %vm1348_vm12, %v1347_v53, %v1345_v33  ;;  %v1464_v58 = vsel %vm1463_vm13, %v1460_v54, %v1462_v49  ;;  %v1465_v59 = vsel %vm1463_vm13, %v1462_v49, %v1460_v54  ;;  %v1650_v13 = vpop.permute.xlu2 %1649 }
 0x1e2   : > { %v1351_v63 = vsel %vm804_vm3, %v1350_v57, 0.0  ;;  %v1352_v0 = vsel %vm805_vm6, %v1349_v56, 0.0  ;;  %v1466_v1 = vsel %vm806_vm8, %v1464_v58, 0.0  ;;  %v1467_v2 = vsel %vm807_vm10, %v1465_v59, 0.0 }
 0x1e3   : > { %2652 = vmatpush.msk.msrb.mxu2 %vm876_vm0, %v1351_v63  ;;  %2654 = vmatpush.msk.msrb.mxu3 %vm876_vm0, %v1352_v0  ;;  %vm808_vm6 = vcmp.ge.s32.totalorder %v3239_v30, 32  ;;  %vm812_vm12 = vcmp.ge.s32.totalorder %v3241_v31, 2  ;;  %vm1895_vm13 = vcmp.lt.s32.totalorder %v3239_v30, 34 }
 0x1e4   : > { %2653 = vmatmul.msk.f32.vlgmr.msrb.gmra.mxu2 %vm872_vm1, %v2651_v60  ;;  %2655 = vmatmul.msk.f32.vlgmr.msrb.gmra.mxu3 %vm872_vm1, %v2651_v60  ;;  %vm3411_vm11 = vmand %vm808_vm6, %vm814_vm7 }
 0x1e5   : > { %2662 = vmatpush.msk.msra.mxu2 %vm876_vm0, %v1466_v1  ;;  %2664 = vmatpush.msk.msra.mxu3 %vm876_vm0, %v1467_v2 }
 0x1e6   : > { %2658 = vmatmul.msk.f32.vlgmr.msra.gmra.mxu0 %vm872_vm1, %v2656_v3  ;;  %2660 = vmatmul.msk.f32.vlgmr.msra.gmra.mxu1 %vm872_vm1, %v2656_v3 }
 0x1e8   : > { %v1522_v5 = vpop.permute.xlu0 %1521  ;;  %v1524_v6 = vpop.permute.xlu1 %1523 }
 0x1e9   : > { %v1526_v7 = vsel %vm1525_vm15, %v1522_v5, %v1524_v6  ;;  %v1527_v8 = vsel %vm1525_vm15, %v1524_v6, %v1522_v5  ;;  %v1735_v28 = vpop.permute.xlu2 %1734  ;;  %vm1898_vm15 = vmand %vm808_vm6, %vm812_vm12 }
 0x1ea   : > { %v1530_v10 = vsel %vm804_vm3, %v1526_v7, 0.0  ;;  %v1531_v11 = vsel %vm1529_vm2, %v1527_v8, 0.0  ;;  %vm3345_vm3 = vmand %vm803_vm14, %vm807_vm10  ;;  %v1739_v34 = vperm.slane %v1735_v28, %v3140_v16  ;;  %vm815_vm10 = vcmp.lt.s32.totalorder %v3243_v32, 14 }
 0x1eb   : > { %2667 = vmatpush.msk.msrb.mxu0 %vm876_vm0, %v1530_v10  ;;  %2669 = vmatpush.msk.msrb.mxu1 %vm876_vm0, %v1531_v11  ;;  %vm811_vm2 = vcmp.lt.s32.totalorder %v3295_v55, 224 }
 0x1ec   : > { %2663 = vmatmul.msk.f32.vlgmr.msra.gmra.mxu2 %vm872_vm1, %v2661_v9  ;;  %2665 = vmatmul.msk.f32.vlgmr.msra.gmra.mxu3 %vm872_vm1, %v2661_v9 }
 0x1ee   : > { %2668 = vmatmul.msk.f32.vlgmr.msrb.gmra.mxu0 %vm872_vm1, %v2666_v12  ;;  %2670 = vmatmul.msk.f32.vlgmr.msrb.gmra.mxu1 %vm872_vm1, %v2666_v12 }
 0x1f0   : > { %v1588_v15 = vpop.permute.xlu0 %1587  ;;  %v1648_v17 = vpop.permute.xlu1 %1647 }
 0x1f1   : > { %v1590_v19 = vsel %vm1589_vm4, %v1586_v4, %v1588_v15  ;;  %v1591_v20 = vsel %vm1589_vm4, %v1588_v15, %v1586_v4  ;;  %v1652_v21 = vsel %vm1651_vm5, %v1648_v17, %v1650_v13  ;;  %v1653_v22 = vsel %vm1651_vm5, %v1650_v13, %v1648_v17 }
 0x1f2   : > { %v1593_v24 = vsel %vm803_vm14, %v1591_v20, 0.0  ;;  %v1656_v25 = vsel %vm806_vm8, %v1652_v21, 0.0  ;;  %v1657_v26 = vsel %vm3345_vm3, %v1653_v22, 0.0  ;;  %2672 = vmatpush.msk.msrb.mxu2 %vm876_vm0, %v1590_v19  ;;  %vm2016_vm8 = vcmp.lt.s32.totalorder %v3239_v30, 30 }
 0x1f3   : > { %2674 = vmatpush.msk.msrb.mxu3 %vm876_vm0, %v1593_v24  ;;  %2677 = vmatpush.msk.msra.mxu0 %vm876_vm0, %v1656_v25  ;;  %vm813_vm14 = vcmp.ge.s32.totalorder %v3243_v32, 2  ;;  %vm2257_vm4 = vcmp.lt.s32.totalorder %v3239_v30, 98  ;;  %vm2080_vm5 = vcmp.lt.s32.totalorder %v3239_v30, 2  ;;  %v2726_v32 = vld [vmem:[%s3605_s22 + $0x1c] sm:$0xf] }
 0x1f4   : > { %2679 = vmatpush.msk.msra.mxu1 %vm876_vm0, %v1657_v26  ;;  %2673 = vmatmul.msk.f32.vlgmr.msrb.gmra.mxu2 %vm872_vm1, %v2671_v23  ;;  %v1763_v26 = vld [vmem:[%s3603_s20] sm:$0xf]  ;;  %vm2261_vm3 = vmand %vm811_vm2, %vm813_vm14 }
 0x1f5   : > { %2675 = vmatmul.msk.f32.vlgmr.msrb.gmra.mxu3 %vm872_vm1, %v2671_v23 }
 0x1f6   : > { %2678 = vmatmul.msk.f32.vlgmr.msra.gmra.mxu0 %vm872_vm1, %v2676_v27  ;;  %2680 = vmatmul.msk.f32.vlgmr.msra.gmra.mxu1 %vm872_vm1, %v2676_v27 }
 0x1f8   : > { %v1723_v29 = vpop.permute.xlu0 %1722  ;;  %v1715_v2 = vpop.permute.xlu1 %1714 }
 0x1f9   : > { %v1727_v33 = vperm.slane %v1723_v29, %v3140_v16 }
 0x1fb   : > { %v1729_v35 = vmul.f32 %v1727_v33, %v3146_v18  ;;  %v1762_v18 = vld [vmem:[%s3602_s19] sm:$0xf] }
 0x1fd   : > { %v1741_v36 = vadd.f32 %v1739_v34, %v1729_v35 }
 0x1ff   : > { %v1742_v37 = vmax.f32 %v1741_v36, 0.0  ;;  %v1868_v36 = vpop.permute.xlu2 %1867 }
 0x200   : > { %v1747_v14 = vpop.permute.xlu0 %1746  ;;  %v1756_v19 = vpop.permute.xlu1 %1755 }
 0x201   : > { %1814 = vst [vmem:[#allocation1] ss:$2 sm:$0xff] %v1742_v37 }
 0x208   : > { %v1815_v38 = vld.sshfl [vmem:[#allocation1] sm:$0xff pattern:$0x75316420]  ;;  %v1816_v39 = vld.sshfl [vmem:[#allocation1 + $0x8] sm:$0xff pattern:$0x75316420] }
 0x209   : > { %2687 = vmatpush.msk.msrb.mxu0 %vm876_vm0, %v1815_v38  ;;  %2689 = vmatpush.msk.msrb.mxu1 %vm876_vm0, %v1816_v39  ;;  %v1876_v39 = vpop.permute.xlu0 %1875 }
 0x20a   : > { %2688 = vmatmul.msk.f32.vlgmr.msrb.gmra.mxu0 %vm872_vm1, %v1762_v18  ;;  %2690 = vmatmul.msk.f32.vlgmr.msrb.gmra.mxu1 %vm872_vm1, %v1762_v18  ;;  %v972_v18 = vld [vmem:[%s3601_s18] sm:$0xf] }
 0x251   : > { %v1228_v40 = vpop.f32.mrf.mxu1 }
 0x252   : > { %v1208_v41 = vpop.f32.mrf.mxu0 }
 0x258   : > { %v1277_v44 = vpop.f32.mrf.mxu3 }
 0x259   : > { %v1339_v43 = vpop.f32.mrf.mxu1  ;;  %v1257_v45 = vpop.f32.mrf.mxu2  ;;  %v1278_v48 = vadd.f32 %v1277_v44, %v1228_v40 }
 0x25a   : > { %v1258_v16 = vadd.f32 %v1257_v45, %v1208_v41 }
 0x25b   : > { %v1319_v42 = vpop.f32.mrf.mxu0  ;;  %v1343_v52 = vadd.f32 %v1339_v43, %v1278_v48 }
 0x25c   : > { %v1342_v51 = vadd.f32 %v1319_v42, %v1258_v16  ;;  %v1885_v42 = vpop.permute.xlu1 %1884  ;;  %v2443_v16 = vld [vmem:[%s3606_s23] sm:$0xf] }
 0x263   : > { %v1434_v46 = vpop.f32.mrf.mxu0  ;;  %v1454_v47 = vpop.f32.mrf.mxu1 }
 0x267   : > { %v1381_v49 = vpop.f32.mrf.mxu2  ;;  %v1401_v50 = vpop.f32.mrf.mxu3 }
 0x268   : > { %v1404_v53 = vadd.f32 %v1381_v49, %v1342_v51  ;;  %v1405_v54 = vadd.f32 %v1401_v50, %v1343_v52 }
 0x26a   : > { %v1457_v60 = vadd.f32 %v1434_v46, %v1404_v53  ;;  %v1458_v63 = vadd.f32 %v1454_v47, %v1405_v54 }
 0x26b   : > { %v1560_v56 = vpop.f32.mrf.mxu0  ;;  %v1580_v57 = vpop.f32.mrf.mxu1 }
 0x26f   : > { %v1496_v58 = vpop.f32.mrf.mxu2  ;;  %v1516_v59 = vpop.f32.mrf.mxu3 }
 0x270   : > { %v1519_v0 = vadd.f32 %v1496_v58, %v1457_v60  ;;  %v1520_v1 = vadd.f32 %v1516_v59, %v1458_v63 }
 0x272   : > { %v1583_v3 = vadd.f32 %v1560_v56, %v1519_v0  ;;  %v1584_v4 = vadd.f32 %v1580_v57, %v1520_v1  ;;  %v2692_v56 = vld [vmem:[%s3605_s22 + $0x4] sm:$0xf] }
 0x273   : > { %v1686_v6 = vpop.f32.mrf.mxu0  ;;  %v1706_v9 = vpop.f32.mrf.mxu1 }
 0x277   : > { %v1622_v5 = vpop.f32.mrf.mxu2 }
 0x278   : > { %v1645_v7 = vadd.f32 %v1622_v5, %v1583_v3  ;;  %v1642_v8 = vpop.f32.mrf.mxu3  ;;  %v2701_v5 = vld [vmem:[%s3605_s22 + $0x8] sm:$0xf] }
 0x279   : > { %v1646_v10 = vadd.f32 %v1642_v8, %v1584_v4 }
 0x27a   : > { %v1709_v11 = vadd.f32 %v1686_v6, %v1645_v7  ;;  %v1902_v6 = vld [vmem:[%s3605_s22] sm:$0xf] }
 0x27b   : > { %v1710_v12 = vadd.f32 %v1706_v9, %v1646_v10 }
 0x27c   : > { %v1717_v13 = vadd.f32 %v1715_v2, %v1709_v11 }
 0x27d   : > { %v1718_v15 = vadd.f32 %v1715_v2, %v1710_v12 }
 0x27e   : > { %v1749_v17 = vmul.f32 %v1747_v14, %v1717_v13 }
 0x27f   : > { %v1750_v20 = vmul.f32 %v1747_v14, %v1718_v15  ;;  %v2455_v21 = vrot.slane %v1718_v15, 4 }
 0x280   : > { %v1758_v22 = vadd.f32 %v1756_v19, %v1749_v17 }
 0x281   : > { %v1759_v23 = vadd.f32 %v1756_v19, %v1750_v20  ;;  %v2456_v24 = vsel %vm876_vm0, %v1717_v13, %v2455_v21  ;;  %v2711_v20 = vld [vmem:[%s3605_s22 + $0x10] sm:$0xf]  ;;  %v2706_v21 = vld [vmem:[%s3605_s22 + $0xc] sm:$0xf] }
 0x282   : > { %v1760_v25 = vmax.f32 %v1758_v22, 0.0  ;;  %2458 = vst [vmem:[%s3389_s29] sm:$0xff] %v2456_v24 }
 0x283   : > { %v1761_v27 = vmax.f32 %v1759_v23, 0.0 }
 0x284   : > { %2683 = vmatpush.msk.msra.mxu2 %vm876_vm0, %v1760_v25 }
 0x285   : > { %2685 = vmatpush.msk.msra.mxu3 %vm876_vm0, %v1761_v27  ;;  %2684 = vmatmul.msk.f32.vlgmr.msra.gmra.mxu2 %vm872_vm1, %v1763_v26 }
 0x286   : > { %2686 = vmatmul.msk.f32.vlgmr.msra.gmra.mxu3 %vm872_vm1, %v1763_v26 }
 0x287   : > { %v1841_v28 = vpop.f32.mrf.mxu0  ;;  %v1861_v29 = vpop.f32.mrf.mxu1 }
 0x308   : > { %v1790_v33 = vpop.f32.mrf.mxu2 }
 0x309   : > { %v1810_v34 = vpop.f32.mrf.mxu3  ;;  %v1842_v35 = vadd.f32 %v1841_v28, %v1790_v33  ;;  %v2716_v33 = vld [vmem:[%s3605_s22 + $0x14] sm:$0xf] }
 0x30a   : > { %v1862_v37 = vadd.f32 %v1861_v29, %v1810_v34  ;;  %v2721_v29 = vld [vmem:[%s3605_s22 + $0x18] sm:$0xf] }
 0x30b   : > { %v1870_v38 = vadd.f32 %v1868_v36, %v1842_v35 }
 0x30c   : > { %v1871_v40 = vadd.f32 %v1868_v36, %v1862_v37 }
 0x30d   : > { %v1878_v41 = vmul.f32 %v1876_v39, %v1870_v38 }
 0x30e   : > { %v1879_v43 = vmul.f32 %v1876_v39, %v1871_v40 }
 0x30f   : > { %v1887_v44 = vadd.f32 %v1885_v42, %v1878_v41 }
 0x310   : > { %v1888_v45 = vadd.f32 %v1885_v42, %v1879_v43 }
 0x311   : > { %v1889_v46 = vmax.f32 %v1887_v44, 0.0  ;;  %v2731_v44 = vld [vmem:[%s3605_s22 + $0x20] sm:$0xf] }
 0x312   : > { %v1890_v47 = vmax.f32 %v1888_v45, 0.0 }
 0x313   : > { %2012 = vrot.lane.b32.xlu1 %v1889_v46, %s2919_s28  ;;  %1903 = vrot.lane.b32.xlu2 %v1889_v46, %s2920_s27 }
 0x314   : > { %1905 = vrot.lane.b32.xlu0 %v1890_v47, %s2920_s27 }
 0x31b   : > { %1893 = vrot.lane.b32.xlu1 %v1890_v47, %s2921_s1  ;;  %2014 = vrot.lane.b32.xlu2 %v1890_v47, %s2919_s28  ;;  %s2466_s28 = scalar_lea.sflag [#allocation3], %s3380_s3 }
 0x31c   : > { %1891 = vrot.lane.b32.xlu0 %v1889_v46, %s2921_s1 }
 0x323   : > { %2253 = vrot.lane.b32.xlu1 %v1889_v46, %s2922_s9  ;;  %2076 = vrot.lane.b32.xlu2 %v1889_v46, %s2923_s5 }
 0x324   : > { %2078 = vrot.lane.b32.xlu0 %v1890_v47, %s2923_s5 }
 0x32b   : > { %2193 = vrot.lane.b32.xlu1 %v1890_v47, %s2924_s11  ;;  %2255 = vrot.lane.b32.xlu2 %v1890_v47, %s2922_s9 }
 0x32c   : > { %2191 = vrot.lane.b32.xlu0 %v1889_v46, %s2924_s11  ;;  %s3678_s11 = sld [smem:[#allocation30_spill]] }
 0x332   : > { %s2833_s13 = scalar_lea.hbm %s3678_s11, 16 }
 0x333   : > { %2317 = vrot.lane.b32.xlu1 %v1889_v46, %s2925_s30  ;;  %2379 = vrot.lane.b32.xlu2 %v1889_v46, %s2926_s6 }
 0x334   : > { %2381 = vrot.lane.b32.xlu0 %v1890_v47, %s2926_s6  ;;  %s2484_s6 = sshll.u32 %s3389_s29, 4  ;;  %s2485_s6 = int_to_ptr.vmem [resolvable:$true] %s2484_s6 }
 0x33b   : > { %2446 = vperm.xlu1 %2811, %v2443_v16   ;;  %2319 = vrot.lane.b32.xlu2 %v1890_v47, %s2925_s30  ;;  %s2482_s30 = scalar_lea.hbm %s3678_s11, %s2746_s8 }
 0x33c   : > { %975 = vperm.xlu0 %2810, %v972_v18   ;;  %s2486_s27 = sshll.u32 %s2482_s30, 4  ;;  %s2487_s27 = int_to_ptr.hbm [resolvable:$true] %s2486_s27 }
 0x33d   : > { %s2827_s1 = sshra.s32 %s2487_s27, 4  ;;  %s2828_s1 = int_to_ptr.hbm [resolvable:$true] %s2827_s1 }
 0x33e   : > { %s2829_s0 = scalar_lea.hbm %s2828_s1, 8  ;;  %p2834_p0 = scmp.lt.s32.totalorder %s2828_s1, %s3678_s11 }
 0x33f   : > { %p2830_p11 = scmp.ne.s32.totalorder %s2828_s1, %s2829_s0  ;;  %p2835_p1 = scmp.lt.s32.totalorder %s2833_s13, %s2829_s0 }
 0x341   : > { %p2831_p12 = pnand %p2830_p11, %p3095_p5  ;;  %p2836_p2 = por %p2835_p1, %p2834_p0 }
 0x343   : > { %p2832_p13 = pneg %p2831_p12 }
 0x345   : > { %p2837_p3 = pnand %p2836_p2, %p2832_p13 }
 0x36d   : > { %v1904_v48 = vpop.permute.xlu2 %1903 }
 0x375   : > { %v2015_v49 = vpop.permute.xlu2 %2014 }
 0x37d   : > { %v2077_v57 = vpop.permute.xlu2 %2076 }
 0x385   : > { %v2013_v51 = vpop.permute.xlu1 %2012  ;;  %v2256_v9 = vpop.permute.xlu2 %2255 }
 0x386   : > { %v1906_v52 = vpop.permute.xlu0 %1905  ;;  %v2017_v53 = vsel %vm2016_vm8, %v2013_v51, %v2015_v49  ;;  %v2018_v54 = vsel %vm2016_vm8, %v2015_v49, %v2013_v51  ;;  %vm2321_vm8 = vcmp.lt.s32.totalorder %v3239_v30, 96 }
 0x387   : > { %v1908_v58 = vsel %vm1907_vm9, %v1904_v48, %v1906_v52  ;;  %v1909_v59 = vsel %vm1907_vm9, %v1906_v52, %v1904_v48  ;;  %v2022_v60 = vsel %vm815_vm10, %v2017_v53, 0.0  ;;  %v2021_v0 = vsel %vm3411_vm11, %v2018_v54, 0.0  ;;  %vm3503_vm11 = vmand %vm811_vm2, %vm815_vm10 }
 0x388   : > { %v1910_v63 = vsel %vm808_vm6, %v1909_v59, 0.0  ;;  %2695 = vmatpush.msk.msrb.mxu3 %vm876_vm0, %v1908_v58  ;;  %vm2195_vm6 = vcmp.lt.s32.totalorder %v3239_v30, 126  ;;  %vm2383_vm9 = vcmp.lt.s32.totalorder %v3239_v30, 94 }
 0x389   : > { %2693 = vmatpush.msk.msrb.mxu2 %vm876_vm0, %v1910_v63  ;;  %2696 = vmatmul.msk.f32.vlgmr.msrb.gmra.mxu3 %vm872_vm1, %v2692_v56 }
 0x38a   : > { %2704 = vmatpush.msk.msra.mxu3 %vm876_vm0, %v2022_v60  ;;  %2694 = vmatmul.msk.f32.vlgmr.msrb.gmra.mxu2 %vm872_vm1, %v2692_v56 }
 0x38b   : > { %2702 = vmatpush.msk.msra.mxu2 %vm876_vm0, %v2021_v0 }
 0x38c   : > { %2714 = vmatpush.msk.msrb.mxu3 %vm876_vm0, %v1890_v47 }
 0x38d   : > { %2712 = vmatpush.msk.msrb.mxu2 %vm876_vm0, %v1889_v46  ;;  %v1894_v1 = vpop.permute.xlu1 %1893  ;;  %v2380_v24 = vpop.permute.xlu2 %2379 }
 0x38e   : > { %v1892_v2 = vpop.permute.xlu0 %1891 }
 0x38f   : > { %v1896_v3 = vsel %vm1895_vm13, %v1892_v2, %v1894_v1  ;;  %v1897_v4 = vsel %vm1895_vm13, %v1894_v1, %v1892_v2 }
 0x390   : > { %v1900_v7 = vsel %vm1898_vm15, %v1897_v4, 0.0  ;;  %v1901_v8 = vsel %vm813_vm14, %v1896_v3, 0.0 }
 0x391   : > { %2697 = vmatpush.msk.msra.mxu0 %vm876_vm0, %v1900_v7  ;;  %2699 = vmatpush.msk.msra.mxu1 %vm876_vm0, %v1901_v8 }
 0x392   : > { %2705 = vmatmul.msk.f32.vlgmr.msra.gmra.mxu3 %vm872_vm1, %v2701_v5  ;;  %2698 = vmatmul.msk.f32.vlgmr.msra.gmra.mxu0 %vm872_vm1, %v1902_v6 }
 0x393   : > { %2700 = vmatmul.msk.f32.vlgmr.msra.gmra.mxu1 %vm872_vm1, %v1902_v6  ;;  %2703 = vmatmul.msk.f32.vlgmr.msra.gmra.mxu2 %vm872_vm1, %v2701_v5 }
 0x395   : > { %v2254_v10 = vpop.permute.xlu1 %2253  ;;  %v2320_v36 = vpop.permute.xlu2 %2319 }
 0x396   : > { %v2079_v11 = vpop.permute.xlu0 %2078  ;;  %v2258_v12 = vsel %vm2257_vm4, %v2254_v10, %v2256_v9  ;;  %v2259_v13 = vsel %vm2257_vm4, %v2256_v9, %v2254_v10 }
 0x397   : > { %v2081_v14 = vsel %vm2080_vm5, %v2077_v57, %v2079_v11  ;;  %v2082_v15 = vsel %vm2080_vm5, %v2079_v11, %v2077_v57  ;;  %v2262_v17 = vsel %vm812_vm12, %v2258_v12, 0.0  ;;  %v2263_v19 = vsel %vm2261_vm3, %v2259_v13, 0.0 }
 0x398   : > { %v2083_v22 = vsel %vm812_vm12, %v2082_v15, 0.0  ;;  %v2084_v23 = vsel %vm813_vm14, %v2081_v14, 0.0  ;;  %2722 = vmatpush.msk.msra.mxu2 %vm876_vm0, %v2262_v17  ;;  %2724 = vmatpush.msk.msra.mxu3 %vm876_vm0, %v2263_v19 }
 0x399   : > { %2707 = vmatpush.msk.msrb.mxu0 %vm876_vm0, %v2083_v22  ;;  %2709 = vmatpush.msk.msrb.mxu1 %vm876_vm0, %v2084_v23 }
 0x39a   : > { %2715 = vmatmul.msk.f32.vlgmr.msrb.gmra.mxu3 %vm872_vm1, %v2711_v20  ;;  %2708 = vmatmul.msk.f32.vlgmr.msrb.gmra.mxu0 %vm872_vm1, %v2706_v21 }
 0x39b   : > { %2710 = vmatmul.msk.f32.vlgmr.msrb.gmra.mxu1 %vm872_vm1, %v2706_v21  ;;  %2713 = vmatmul.msk.f32.vlgmr.msrb.gmra.mxu2 %vm872_vm1, %v2711_v20 }
 0x39d   : > { %v2194_v25 = vpop.permute.xlu1 %2193 }
 0x39e   : > { %v2192_v26 = vpop.permute.xlu0 %2191 }
 0x39f   : > { %v2196_v27 = vsel %vm2195_vm6, %v2192_v26, %v2194_v25  ;;  %v2197_v28 = vsel %vm2195_vm6, %v2194_v25, %v2192_v26 }
 0x3a0   : > { %v2198_v34 = vsel %vm814_vm7, %v2196_v27, 0.0  ;;  %v2199_v35 = vsel %vm815_vm10, %v2197_v28, 0.0 }
 0x3a1   : > { %2717 = vmatpush.msk.msra.mxu0 %vm876_vm0, %v2198_v34  ;;  %2719 = vmatpush.msk.msra.mxu1 %vm876_vm0, %v2199_v35 }
 0x3a2   : > { %2725 = vmatmul.msk.f32.vlgmr.msra.gmra.mxu3 %vm872_vm1, %v2721_v29  ;;  %2718 = vmatmul.msk.f32.vlgmr.msra.gmra.mxu0 %vm872_vm1, %v2716_v33 }
 0x3a3   : > { %2720 = vmatmul.msk.f32.vlgmr.msra.gmra.mxu1 %vm872_vm1, %v2716_v33  ;;  %2723 = vmatmul.msk.f32.vlgmr.msra.gmra.mxu2 %vm872_vm1, %v2721_v29 }
 0x3a5   : > { %v2318_v38 = vpop.permute.xlu1 %2317 }
 0x3a6   : > { %v2382_v39 = vpop.permute.xlu0 %2381  ;;  %v2322_v40 = vsel %vm2321_vm8, %v2318_v38, %v2320_v36  ;;  %v2323_v41 = vsel %vm2321_vm8, %v2320_v36, %v2318_v38 }
 0x3a7   : > { %v2384_v42 = vsel %vm2383_vm9, %v2380_v24, %v2382_v39  ;;  %v2385_v43 = vsel %vm2383_vm9, %v2382_v39, %v2380_v24  ;;  %v2325_v30 = vsel %vm811_vm2, %v2323_v41, 0.0  ;;  %2727 = vmatpush.msk.msrb.mxu0 %vm876_vm0, %v2322_v40 }
 0x3a8   : > { %v2388_v45 = vsel %vm814_vm7, %v2384_v42, 0.0  ;;  %v2389_v46 = vsel %vm3503_vm11, %v2385_v43, 0.0  ;;  %2729 = vmatpush.msk.msrb.mxu1 %vm876_vm0, %v2325_v30 }
 0x3a9   : > { %2732 = vmatpush.msk.msrb.mxu2 %vm876_vm0, %v2388_v45  ;;  %2734 = vmatpush.msk.msrb.mxu3 %vm876_vm0, %v2389_v46 }
 0x3aa   : > { %2728 = vmatmul.msk.f32.vlgmr.msrb.gmra.mxu0 %vm872_vm1, %v2726_v32  ;;  %2735 = vmatmul.msk.f32.vlgmr.msrb.gmra.mxu3 %vm872_vm1, %v2731_v44 }
 0x3ab   : > { %2730 = vmatmul.msk.f32.vlgmr.msrb.gmra.mxu1 %vm872_vm1, %v2726_v32  ;;  %2733 = vmatmul.msk.f32.vlgmr.msrb.gmra.mxu2 %vm872_vm1, %v2731_v44 }
 0x3ac   : > { %2840 = shalt.err (!%p2837_p3)
}
 0x3ad   : > { %2748 = dma.vmem_to_hbm [thread:$0]  (%p3095_p5), %s2485_s6, 128, %s2487_s27, %s2466_s28   ;;  %v2447_v17 = vpop.permute.xlu1 %2446 }
 0x3ae   : > { %v976_v11 = vpop.permute.xlu0 %975  ;;  %s3679_s13 = sld [smem:[#allocation31_spill]]  ;;  %s3680_s15 = sshll.u32 %s3380_s3, 3 }
 0x3af   : > { %v979_v20 = vadd.f32 %v976_v11, %v3190_v62  ;;  %v978_v23 = vadd.f32 %v976_v11, %v3188_v61  ;;  %s783_s0 = scalar_lea.vmem [#allocation4], %s3680_s15  ;;  %s2471_s7 = scalar_lea.sflag [#allocation5], %s3380_s3 }
 0x3b0   : > { %s2499_s29 = sshll.u32 %s783_s0, 4  ;;  %s2500_s29 = int_to_ptr.vmem [resolvable:$true] %s2499_s29 }
 0x3b4   : > { %s2497_s14 = scalar_lea.hbm %s3679_s13, %s2746_s8  ;;  %s2861_s27 = scalar_lea.hbm %s3679_s13, 16 }
 0x3b5   : > { %s2501_s9 = sshll.u32 %s2497_s14, 4  ;;  %s2502_s9 = int_to_ptr.hbm [resolvable:$true] %s2501_s9 }
 0x3b6   : > { %s2855_s8 = sshra.s32 %s2502_s9, 4  ;;  %s2856_s8 = int_to_ptr.hbm [resolvable:$true] %s2855_s8 }
 0x3b7   : > { %s2857_s5 = scalar_lea.hbm %s2856_s8, 8  ;;  %p2862_p9 = scmp.lt.s32.totalorder %s2856_s8, %s3679_s13 }
 0x3b8   : > { %p2858_p4 = scmp.ne.s32.totalorder %s2856_s8, %s2857_s5  ;;  %p2863_p10 = scmp.lt.s32.totalorder %s2861_s27, %s2857_s5 }
 0x3ba   : > { %p2859_p7 = pnand %p2858_p4, %p3095_p5  ;;  %p2864_p11 = por %p2863_p10, %p2862_p9 }
 0x3bc   : > { %p2860_p8 = pneg %p2859_p7 }
 0x3be   : > { %p2865_p12 = pnand %p2864_p11, %p2860_p8 }
 0x40c   : > { %v1960_v31 = vpop.f32.mrf.mxu3 }
 0x40d   : > { %v1940_v55 = vpop.f32.mrf.mxu2 }
 0x40f   : > { %v1989_v47 = vpop.f32.mrf.mxu0 }
 0x410   : > { %v2009_v16 = vpop.f32.mrf.mxu1  ;;  %v1990_v52 = vadd.f32 %v1989_v47, %v1940_v55 }
 0x411   : > { %v2010_v51 = vadd.f32 %v2009_v16, %v1960_v31 }
 0x415   : > { %v2071_v18 = vpop.f32.mrf.mxu3 }
 0x416   : > { %v2051_v48 = vpop.f32.mrf.mxu2  ;;  %v2075_v53 = vadd.f32 %v2071_v18, %v2010_v51 }
 0x417   : > { %v2113_v49 = vpop.f32.mrf.mxu0  ;;  %v2074_v54 = vadd.f32 %v2051_v48, %v1990_v52 }
 0x418   : > { %v2133_v50 = vpop.f32.mrf.mxu1 }
 0x419   : > { %v2137_v58 = vadd.f32 %v2133_v50, %v2075_v53  ;;  %v2136_v63 = vadd.f32 %v2113_v49, %v2074_v54 }
 0x41d   : > { %v2186_v56 = vpop.f32.mrf.mxu3 }
 0x41e   : > { %v2166_v57 = vpop.f32.mrf.mxu2  ;;  %v2190_v0 = vadd.f32 %v2186_v56, %v2137_v58 }
 0x41f   : > { %v2228_v59 = vpop.f32.mrf.mxu0  ;;  %v2189_v1 = vadd.f32 %v2166_v57, %v2136_v63 }
 0x420   : > { %v2248_v60 = vpop.f32.mrf.mxu1 }
 0x421   : > { %v2252_v3 = vadd.f32 %v2248_v60, %v2190_v0  ;;  %v2251_v5 = vadd.f32 %v2228_v59, %v2189_v1 }
 0x425   : > { %v2312_v2 = vpop.f32.mrf.mxu3 }
 0x426   : > { %v2292_v4 = vpop.f32.mrf.mxu2  ;;  %v2316_v6 = vadd.f32 %v2312_v2, %v2252_v3 }
 0x427   : > { %v2315_v7 = vadd.f32 %v2292_v4, %v2251_v5  ;;  %v2354_v9 = vpop.f32.mrf.mxu0 }
 0x428   : > { %v2374_v8 = vpop.f32.mrf.mxu1 }
 0x429   : > { %v2378_v10 = vadd.f32 %v2374_v8, %v2316_v6  ;;  %v2377_v12 = vadd.f32 %v2354_v9, %v2315_v7 }
 0x42d   : > { %v2438_v13 = vpop.f32.mrf.mxu3 }
 0x42e   : > { %v2418_v14 = vpop.f32.mrf.mxu2  ;;  %v2442_v15 = vadd.f32 %v2438_v13, %v2378_v10 }
 0x42f   : > { %v2441_v19 = vadd.f32 %v2418_v14, %v2377_v12 }
 0x430   : > { %v2450_v21 = vadd.f32 %v2447_v17, %v2442_v15 }
 0x431   : > { %v2449_v22 = vadd.f32 %v2447_v17, %v2441_v19 }
 0x432   : > { %v2452_v24 = vadd.f32 %v2450_v21, %v979_v20 }
 0x433   : > { %v2451_v25 = vadd.f32 %v2449_v22, %v978_v23 }
 0x434   : > { %v2461_v26 = vrot.slane %v2452_v24, 4 }
 0x436   : > { %v2462_v27 = vsel %vm876_vm0, %v2451_v25, %v2461_v26 }
 0x437   : > { %2464 = vst [vmem:[%s783_s0] sm:$0xff] %v2462_v27 }
 0x438   : > { %2868 = shalt.err (!%p2865_p12)
}
 0x439   : > { %2749 = dma.vmem_to_hbm [thread:$0]  (%p3095_p5), %s2500_s29, 128, %s2502_s9, %s2471_s7  }
 0x43a PF: > { %s3681_s3 = sld [smem:[#allocation10_spill]] }
 0x43b   : > { %s3682_s10 = sld [smem:[#allocation8_spill]] }
 0x440   : > { %p2759_p13 = scmp.ge.s32.totalorder %s3681_s3, 2 }
 0x441   : > { %s2513_s14 = sand.u32 1, %s3682_s10  }
 0x442   : > { %p2753_p0 = pnand %p2759_p13, %p3099_p6  ;;  %s2514_s15 = scalar_lea.sflag [#allocation3], %s2513_s14 }
 0x444   : > { %p2754_p1 = pneg %p2753_p0 }
 0x446   : > { %2886 = dma.done.wait (%p2754_p1), %s2514_s15, 128  }
 0x447   : > { %2888 = vsyncadd (%p2754_p1), %s2514_s15, 4294967168  ;;  %s2524_s0 = scalar_lea.sflag [#allocation5], %s2513_s14 }
 0x448   : > { %2890 = dma.done.wait (%p2754_p1), %s2524_s0, 128  }
 0x449   : > { %2892 = vsyncadd (%p2754_p1), %s2524_s0, 4294967168  ;;  %s3684_s30 = sld [smem:[#allocation11_spill]]  ;;  %s3687_s29 = smov %s2899_s2 }
 0x44a   : > { %s3685_s8 = sld [smem:[#allocation9_spill]] }
 0x44b   : > { %s3686_s6 = sld [smem:[#allocation12_spill]] }
 0x44f   : > { %p39_p5 = scmp.ge.s32.totalorder %s3684_s30, 4  }
 0x450   : > { %s3688_s2 = smov %s3685_s8 }
 0x451   :  { %41 = sbr.rel (!%p39_p5) target bundleno = 24 (0x18), region = 195 }
 0x456   :  { %2530 = vsyncpa [#allocation3], 1 }
 0x457   :  { %2532 = vsyncpa [#allocation3 + $0x1], 1 }
 0x458   :  { %2533 = vsyncpa [#allocation5], 1 }
 0x459   :  { %2535 = vsyncpa [#allocation5 + $0x1], 1 }

</bundles_post_ra>
